<compile_context>
chip_gen: v6e
topology: v6e:2x2x1
jax: 0.10.0
libtpu: 0.0.40
codegen_flags: <defaults>
</compile_context>

<pallas_src>
import functools
import math

import jax
import jax.numpy as jnp
from jax.experimental import pallas as pl
from jax.experimental.pallas import tpu as pltpu

# Use the EUP approximate reciprocal in the softmax denominator (inference).
# Set False for exact allclose validation against the PyTorch reference.
APPROX_RECIPROCAL = True
LN_EPS = 1e-12   # espnet LayerNorm eps


# ----------------------------- small helpers -----------------------------

def _choose_bm(M, cap=256):
    """Pick an M-tile. Returns (bm, padded_M); pads if no clean divisor."""
    if M <= cap:
        return M, M
    for bm in (256, 128):                      # MXU-aligned first
        if bm <= cap and M % bm == 0:
            return bm, M
    for bm in range(cap - cap % 8, 7, -8):     # any 8-aligned divisor
        if M % bm == 0:
            return bm, M
    bm = cap - cap % 8
    pad = (-M) % bm
    return bm, M + pad                          # pad-and-slice fallback


def _maybe_pad_rows(x, Mp):
    M = x.shape[0]
    if Mp == M:
        return x
    return jnp.pad(x, ((0, Mp - M),) + ((0, 0),) * (x.ndim - 1))


def _zero_map(grid_rank, block_rank):
    zeros = (0,) * block_rank
    if grid_rank == 1:
        return lambda i: zeros
    return lambda i, j: zeros


def _probe_buffered_support():
    """Check once (eagerly, outside any jit trace) whether
    pipeline_mode=pl.Buffered(1) is supported for constant operands."""
    try:
        const_spec = pl.BlockSpec((8, 128), lambda i: (0, 0),
                                  pipeline_mode=pl.Buffered(1))

        def _k(x_ref, w_ref, o_ref):
            o_ref[...] = x_ref[...] + w_ref[...]

        out = pl.pallas_call(
            _k,
            out_shape=jax.ShapeDtypeStruct((16, 128), jnp.float32),
            grid=(2,),
            in_specs=[pl.BlockSpec((8, 128), lambda i: (i, 0)), const_spec],
            out_specs=pl.BlockSpec((8, 128), lambda i: (i, 0)),
        )(jnp.zeros((16, 128), jnp.float32), jnp.ones((8, 128), jnp.float32))
        jax.block_until_ready(out)
        return True
    except Exception:
        return False


_SUPPORTS_BUFFERED = _probe_buffered_support()


def _const_spec(shape, grid_rank):
    """BlockSpec for operands constant across grid steps (weights/biases/PE):
    single-buffered when the runtime supports it (saves VMEM)."""
    imap = _zero_map(grid_rank, len(shape))
    if _SUPPORTS_BUFFERED:
        return pl.BlockSpec(shape, imap, pipeline_mode=pl.Buffered(1))
    return pl.BlockSpec(shape, imap)


def _cparams(grid_rank, est_bytes=None):
    kw = {"dimension_semantics": ("parallel",) * grid_rank}
    if est_bytes is not None:
        # raise scoped VMEM above the 16/32 MiB defaults, keep headroom,
        # stay under v7x's 64 MiB physical VMEM per TensorCore
        kw["vmem_limit_bytes"] = int(min(max(32 << 20, 2 * est_bytes + (16 << 20)),
                                         64 << 20))
    return pltpu.CompilerParams(**kw)


def _recip(x):
    if APPROX_RECIPROCAL:
        return pl.reciprocal(x, approx=True)
    return 1.0 / x


# ----------------------------- Pallas kernels -----------------------------

def _matmul_kernel(x_ref, w_ref, b_ref, o_ref, *, activation):
    x = x_ref[...].astype(jnp.bfloat16)
    acc = jnp.dot(x, w_ref[...], preferred_element_type=jnp.float32)
    acc = acc + b_ref[...]
    if activation == "relu":
        acc = jnp.maximum(acc, 0.0)
    o_ref[...] = acc.astype(o_ref.dtype)


def matmul_bias(x, w_bf16, b, activation=None):
    """x:(M,K) @ w:(K,N) + b, optional fused ReLU. bf16 MXU, f32 accumulate."""
    M, K = x.shape
    N = w_bf16.shape[1]
    bm, Mp = _choose_bm(M)
    xp = _maybe_pad_rows(x, Mp)
    kernel = functools.partial(_matmul_kernel, activation=activation)
    out = pl.pallas_call(
        kernel,
        out_shape=jax.ShapeDtypeStruct((Mp, N), jnp.float32),
        grid=(Mp // bm,),
        in_specs=[pl.BlockSpec((bm, K), lambda i: (i, 0)),
                  _const_spec((K, N), 1),
                  _const_spec((1, N), 1)],
        out_specs=pl.BlockSpec((bm, N), lambda i: (i, 0)),
        compiler_params=_cparams(1),
    )(xp, w_bf16, b.reshape(1, N))
    return out[:M] if Mp != M else out


def _layernorm_kernel(x_ref, g_ref, b_ref, o_ref, *, eps):
    x = x_ref[...].astype(jnp.float32)
    mean = jnp.mean(x, axis=-1, keepdims=True)
    xc = x - mean
    var = jnp.mean(xc * xc, axis=-1, keepdims=True)
    y = xc * jax.lax.rsqrt(var + eps)
    o_ref[...] = (y * g_ref[...] + b_ref[...]).astype(o_ref.dtype)


def layernorm(x, gamma, beta, eps=LN_EPS):
    M, D = x.shape
    bm, Mp = _choose_bm(M)
    xp = _maybe_pad_rows(x, Mp)
    kernel = functools.partial(_layernorm_kernel, eps=eps)
    out = pl.pallas_call(
        kernel,
        out_shape=jax.ShapeDtypeStruct((Mp, D), jnp.float32),
        grid=(Mp // bm,),
        in_specs=[pl.BlockSpec((bm, D), lambda i: (i, 0)),
                  _const_spec((1, D), 1),
                  _const_spec((1, D), 1)],
        out_specs=pl.BlockSpec((bm, D), lambda i: (i, 0)),
        compiler_params=_cparams(1),
    )(xp, gamma.reshape(1, D), beta.reshape(1, D))
    return out[:M] if Mp != M else out


def _ln_qkv_kernel(x_ref, g_ref, b_ref, wq_ref, bq_ref, wkv_ref, bkv_ref,
                   q_ref, kv_ref, *, eps):
    """q = LN(x)@wq + bq ; kv = LN(x)@wkv + bkv   (LN fused; bf16 MXU)."""
    x = x_ref[...].astype(jnp.float32)
    mean = jnp.mean(x, axis=-1, keepdims=True)
    xc = x - mean
    var = jnp.mean(xc * xc, axis=-1, keepdims=True)
    y = (xc * jax.lax.rsqrt(var + eps) * g_ref[...] + b_ref[...]).astype(jnp.bfloat16)
    q = jnp.dot(y, wq_ref[...], preferred_element_type=jnp.float32) + bq_ref[...]
    kv = jnp.dot(y, wkv_ref[...], preferred_element_type=jnp.float32) + bkv_ref[...]
    q_ref[...] = q.astype(q_ref.dtype)
    kv_ref[...] = kv.astype(kv_ref.dtype)


def ln_qkv(x, gamma, beta, wq, bq, wkv, bkv, eps=LN_EPS):
    """Fused LayerNorm + Q/KV projections.  Weights already concatenated &
    cast to bf16 once in prepare_params (not per call)."""
    M, D = x.shape
    bm, Mp = _choose_bm(M)
    xp = _maybe_pad_rows(x, Mp)
    kernel = functools.partial(_ln_qkv_kernel, eps=eps)
    q, kv = pl.pallas_call(
        kernel,
        out_shape=(jax.ShapeDtypeStruct((Mp, D), jnp.bfloat16),
                   jax.ShapeDtypeStruct((Mp, 2 * D), jnp.bfloat16)),
        grid=(Mp // bm,),
        in_specs=[pl.BlockSpec((bm, D), lambda i: (i, 0)),
                  _const_spec((1, D), 1),
                  _const_spec((1, D), 1),
                  _const_spec((D, D), 1),
                  _const_spec((1, D), 1),
                  _const_spec((D, 2 * D), 1),
                  _const_spec((1, 2 * D), 1)],
        out_specs=(pl.BlockSpec((bm, D), lambda i: (i, 0)),
                   pl.BlockSpec((bm, 2 * D), lambda i: (i, 0))),
        compiler_params=_cparams(1),
    )(xp, gamma.reshape(1, D), beta.reshape(1, D),
      wq, bq.reshape(1, D), wkv, bkv.reshape(1, 2 * D))
    if Mp != M:
        q, kv = q[:M], kv[:M]
    return q, kv


def _ffn_kernel(x_ref, g_ref, b_ref, w1_ref, b1_ref, w2_ref, b2_ref, o_ref, *, eps):
    """out = x + ( relu( LN(x) @ w1 + b1 ) @ w2 + b2 )  (whole FFN sublayer)."""
    x = x_ref[...].astype(jnp.float32)
    mean = jnp.mean(x, axis=-1, keepdims=True)
    xc = x - mean
    var = jnp.mean(xc * xc, axis=-1, keepdims=True)
    y = (xc * jax.lax.rsqrt(var + eps) * g_ref[...] + b_ref[...]).astype(jnp.bfloat16)
    h = jnp.dot(y, w1_ref[...], preferred_element_type=jnp.float32) + b1_ref[...]
    h = jnp.maximum(h, 0.0).astype(jnp.bfloat16)
    out = jnp.dot(h, w2_ref[...], preferred_element_type=jnp.float32) + b2_ref[...]
    o_ref[...] = (x + out).astype(o_ref.dtype)


def ffn_block(x, g, b, w1, b1, w2, b2, eps=LN_EPS):
    M, D = x.shape
    F = w1.shape[1]
    # modest bm keeps the (bm, F) ReLU intermediate out of spill territory
    bm, Mp = _choose_bm(M, cap=256)
    xp = _maybe_pad_rows(x, Mp)
    est = bm * D * 4 * 2 + D * F * 2 * 2 + bm * F * 4 + (F + 3 * D) * 4
    kernel = functools.partial(_ffn_kernel, eps=eps)
    out = pl.pallas_call(
        kernel,
        out_shape=jax.ShapeDtypeStruct((Mp, D), jnp.float32),
        grid=(Mp // bm,),
        in_specs=[pl.BlockSpec((bm, D), lambda i: (i, 0)),
                  _const_spec((1, D), 1),
                  _const_spec((1, D), 1),
                  _const_spec((D, F), 1),
                  _const_spec((1, F), 1),
                  _const_spec((F, D), 1),
                  _const_spec((1, D), 1)],
        out_specs=pl.BlockSpec((bm, D), lambda i: (i, 0)),
        compiler_params=_cparams(1, est),
    )(xp, g.reshape(1, D), b.reshape(1, D),
      w1, b1.reshape(1, F), w2, b2.reshape(1, D))
    return out[:M] if Mp != M else out


def _attn_kernel(q_ref, kv_ref, m_ref, x_ref, ow_ref, ob_ref, o_ref, ctx_ref,
                 *, heads, scale):
    """Multi-head attention for one (batch, q-tile) block + output projection
    + residual add.  The head loop writes contexts into a (tq, D) VMEM scratch
    so the output projection is a SINGLE full-K (tq,D)@(D,D) MXU pass."""
    D = q_ref.shape[2]
    dk = D // heads
    q = q_ref[0]                       # (tq, D) bf16
    kv = kv_ref[0]                     # (T, 2D) bf16  ([K | V] columns)
    mask = m_ref[0] > 0.5              # (1, T) bool, broadcasts over query rows
    neg = jnp.finfo(jnp.float32).min
    for h in range(heads):             # heads is small & static
        qh = q[:, h * dk:(h + 1) * dk]
        kh = kv[:, h * dk:(h + 1) * dk]
        vh = kv[:, D + h * dk:D + (h + 1) * dk]
        s = jax.lax.dot_general(qh, kh, (((1,), (1,)), ((), ())),
                                preferred_element_type=jnp.float32) * scale  # (tq, T)
        s = jnp.where(mask, s, neg)                 # masked_fill(mask==0, min)
        s = s - jnp.max(s, axis=-1, keepdims=True)
        e = jnp.exp(s)
        inv = _recip(jnp.sum(e, axis=-1, keepdims=True))
        p = jnp.where(mask, e * inv, 0.0).astype(jnp.bfloat16)   # masked_fill(.., 0)
        ctx_ref[:, h * dk:(h + 1) * dk] = jnp.dot(
            p, vh, preferred_element_type=jnp.float32)
    proj = jnp.dot(ctx_ref[...].astype(jnp.bfloat16), ow_ref[...],
                   preferred_element_type=jnp.float32)
    out = x_ref[0].astype(jnp.float32) + proj + ob_ref[...].astype(jnp.float32)
    o_ref[0] = out.astype(o_ref.dtype)


def attention_block(q, kv, mask_f, x, o_w, o_b, heads, scale):
    """q:(B,T,D) bf16, kv:(B,T,2D) bf16, mask_f:(B,1,T) f32, x:(B,T,D) f32 residual."""
    B, T, D = q.shape
    tq, Tp = _choose_bm(T, cap=256)
    if Tp != T:
        tq = T        # no query padding; fall back to one q tile per batch
    n_qt = T // tq
    # TODO(synk): for very long sequences add key-tiling with an online softmax
    # (flash style) so the (tq,T) scores and the (T,2D) kv block stay within
    # v7x's 64 MiB VMEM.
    est = T * 3 * D * 2 + tq * D * 4 * 2 + D * D * 2 + tq * T * 4 + tq * D * 4
    kernel = functools.partial(_attn_kernel, heads=heads, scale=scale)
    return pl.pallas_call(
        kernel,
        out_shape=jax.ShapeDtypeStruct((B, T, D), jnp.float32),
        grid=(B, n_qt),
        in_specs=[pl.BlockSpec((1, tq, D), lambda b, i: (b, i, 0)),
                  pl.BlockSpec((1, T, 2 * D), lambda b, i: (b, 0, 0)),
                  pl.BlockSpec((1, 1, T), lambda b, i: (b, 0, 0)),
                  pl.BlockSpec((1, tq, D), lambda b, i: (b, i, 0)),
                  _const_spec((D, D), 2),
                  _const_spec((1, D), 2)],
        out_specs=pl.BlockSpec((1, tq, D), lambda b, i: (b, i, 0)),
        scratch_shapes=[pltpu.VMEM((tq, D), jnp.float32)],
        compiler_params=_cparams(2, est),
    )(q, kv, mask_f, x, o_w, o_b.reshape(1, D))


def _embed_kernel(x_ref, w_ref, b_ref, pe_ref, o_ref, *, scale):
    """out = (x @ w + b) * sqrt(d) + positional_encoding   (fused epilogue)."""
    x = x_ref[0].astype(jnp.bfloat16)
    y = jnp.dot(x, w_ref[...], preferred_element_type=jnp.float32) + b_ref[...]
    o_ref[0] = (y * scale + pe_ref[...]).astype(o_ref.dtype)


def embed_linear_pe(x3, w, bias, pe, scale):
    B, T, K = x3.shape
    N = w.shape[1]
    kernel = functools.partial(_embed_kernel, scale=scale)
    return pl.pallas_call(
        kernel,
        out_shape=jax.ShapeDtypeStruct((B, T, N), jnp.float32),
        grid=(B,),
        in_specs=[pl.BlockSpec((1, T, K), lambda b: (b, 0, 0)),
                  _const_spec((K, N), 1),
                  _const_spec((1, N), 1),
                  _const_spec((T, N), 1)],
        out_specs=pl.BlockSpec((1, T, N), lambda b: (b, 0, 0)),
        compiler_params=_cparams(1),
    )(x3, w, bias.reshape(1, N), pe)


# ----------------------------- JAX glue (conv subsampling, PE) -----------------------------

def conv2d_s2_relu_nhwc(x, w_mat, b):
    """NHWC 3x3 stride-2 valid conv as an im2col matmul with fused ReLU.
    x: (B,H,W,Cin); w_mat: (9*Cin, Cout) bf16 (reordered once in prepare_params)."""
    B, H, W, Cin = x.shape
    Ho = (H - 3) // 2 + 1
    Wo = (W - 3) // 2 + 1
    Cout = w_mat.shape[1]
    # TODO(synk): build the 3x3 taps inside the Pallas kernel (strided VMEM reads)
    # so the 9x im2col tensor never round-trips HBM and K is not lane-padded.
    taps = []
    for i in range(3):
        for j in range(3):
            taps.append(x[:, i:i + 2 * Ho:2, j:j + 2 * Wo:2, :])     # (B,Ho,Wo,Cin)
    p = jnp.concatenate(taps, axis=-1).reshape(B * Ho * Wo, 9 * Cin)  # (kh,kw,Cin) order
    y = matmul_bias(p, w_mat, b, activation="relu")
    return y.reshape(B, Ho, Wo, Cout)


def conv2d_subsampling(xs, masks, p, pe):
    """Conv2dSubsampling: two stride-2 3x3 convs + linear + PositionalEncoding."""
    B, T, F = xs.shape
    x = xs[:, :, :, None]                                    # (B, T, F, 1) NHWC
    x = conv2d_s2_relu_nhwc(x, p["conv1_wm"], p["conv1_b"])
    x = conv2d_s2_relu_nhwc(x, p["conv2_wm"], p["conv2_b"])
    B2, T2, F2, C = x.shape
    x = x.reshape(B2, T2, F2 * C)                            # (f, c) feature order
    d = p["out_wm"].shape[1]
    x = embed_linear_pe(x, p["out_wm"], p["out_b"], pe, math.sqrt(d))
    masks = masks[:, :, :-2:2][:, :, :-2:2]
    return x, masks


def positional_encoding(T, d):
    pos = jnp.arange(T, dtype=jnp.float32)[:, None]
    div = jnp.exp(jnp.arange(0, d, 2, dtype=jnp.float32) * -(math.log(10000.0) / d))
    pe = jnp.zeros((T, d), jnp.float32)
    pe = pe.at[:, 0::2].set(jnp.sin(pos * div))
    pe = pe.at[:, 1::2].set(jnp.cos(pos * div))
    return pe


# ----------------------------- Encoder forward -----------------------------

def encoder_forward(xs, masks, pe, params, heads):
    x, masks = conv2d_subsampling(xs, masks, params["embed"], pe)   # (B, T, D) f32
    B, T, D = x.shape
    dk = D // heads
    scale = 1.0 / math.sqrt(dk)
    mask_f = masks.astype(jnp.float32)                              # (B, 1, T)

    for lp in params["layers"]:
        # --- self-attention sublayer (pre-norm, concat_after=False) ---
        q, kv = ln_qkv(x.reshape(B * T, D), lp["ln1_g"], lp["ln1_b"],
                       lp["wq"], lp["bq"], lp["wkv"], lp["bkv"])
        x = attention_block(q.reshape(B, T, D), kv.reshape(B, T, 2 * D),
                            mask_f, x, lp["o_w"], lp["o_b"], heads, scale)
        # --- position-wise feed-forward sublayer (fully fused incl. residual) ---
        x = ffn_block(x.reshape(B * T, D), lp["ln2_g"], lp["ln2_b"],
                      lp["w1"], lp["b1"], lp["w2"], lp["b2"]).reshape(B, T, D)
        # TODO(synk): fuse ln_qkv -> attention -> ffn of a layer into a single
        # pallas_call to remove the remaining inter-kernel HBM round trips.

    xf = layernorm(x.reshape(B * T, D),
                   params["after_norm_g"], params["after_norm_b"])   # after_norm
    return xf.reshape(B, T, D), masks


# ----------------------------- parameters -----------------------------

def init_params(key, idim, d_model, heads, ff, nblocks):
    """Torch-layout parameters (as a checkpoint would provide)."""
    F1 = (idim - 3) // 2 + 1
    F2 = (F1 - 3) // 2 + 1
    keys = jax.random.split(key, 3 + nblocks)
    s = 0.05

    def nrm(k, shape):
        return jax.random.normal(k, shape, dtype=jnp.float32) * s

    embed = {
        "conv1_w": nrm(keys[0], (d_model, 1, 3, 3)),          # torch (Cout,Cin,3,3)
        "conv1_b": jnp.zeros((d_model,), jnp.float32),
        "conv2_w": nrm(keys[1], (d_model, d_model, 3, 3)),
        "conv2_b": jnp.zeros((d_model,), jnp.float32),
        "out_w": nrm(keys[2], (d_model * F2, d_model)),       # rows in torch (c, f) order
        "out_b": jnp.zeros((d_model,), jnp.float32),
    }
    layers = []
    for i in range(nblocks):
        lk = jax.random.split(keys[3 + i], 6)
        layers.append({
            "ln1_g": jnp.ones((d_model,), jnp.float32),
            "ln1_b": jnp.zeros((d_model,), jnp.float32),
            "q_w": nrm(lk[0], (d_model, d_model)), "q_b": jnp.zeros((d_model,), jnp.float32),
            "k_w": nrm(lk[1], (d_model, d_model)), "k_b": jnp.zeros((d_model,), jnp.float32),
            "v_w": nrm(lk[2], (d_model, d_model)), "v_b": jnp.zeros((d_model,), jnp.float32),
            "o_w": nrm(lk[3], (d_model, d_model)), "o_b": jnp.zeros((d_model,), jnp.float32),
            "ln2_g": jnp.ones((d_model,), jnp.float32),
            "ln2_b": jnp.zeros((d_model,), jnp.float32),
            "w1": nrm(lk[4], (d_model, ff)), "b1": jnp.zeros((ff,), jnp.float32),
            "w2": nrm(lk[5], (ff, d_model)), "b2": jnp.zeros((d_model,), jnp.float32),
        })
    return {
        "embed": embed,
        "layers": layers,
        "after_norm_g": jnp.ones((d_model,), jnp.float32),
        "after_norm_b": jnp.zeros((d_model,), jnp.float32),
    }


def prepare_params(raw):
    """One-time parameter preprocessing OUTSIDE the jitted forward:
      * conv / embed weights reordered into matmul layout,
      * K/V projection weights concatenated per layer,
      * all matmul weights cast to bf16 (f32 accumulation stays in-kernel)."""
    bf = jnp.bfloat16
    e = raw["embed"]
    C1out, C1in = e["conv1_w"].shape[0], e["conv1_w"].shape[1]
    C2out, C2in = e["conv2_w"].shape[0], e["conv2_w"].shape[1]
    d = e["out_w"].shape[1]
    F2 = e["out_w"].shape[0] // C2out
    embed = {
        # (Cout,Cin,3,3) -> (kh,kw,Cin,Cout) -> (9*Cin, Cout): matches tap order
        "conv1_wm": e["conv1_w"].transpose(2, 3, 1, 0).reshape(9 * C1in, C1out).astype(bf),
        "conv1_b": e["conv1_b"],
        "conv2_wm": e["conv2_w"].transpose(2, 3, 1, 0).reshape(9 * C2in, C2out).astype(bf),
        "conv2_b": e["conv2_b"],
        # torch rows are (c, f); our NHWC activations flatten as (f, c)
        "out_wm": e["out_w"].reshape(C2out, F2, d).transpose(1, 0, 2)
                             .reshape(F2 * C2out, d).astype(bf),
        "out_b": e["out_b"],
    }
    layers = []
    for lp in raw["layers"]:
        layers.append({
            "ln1_g": lp["ln1_g"], "ln1_b": lp["ln1_b"],
            "wq": lp["q_w"].astype(bf), "bq": lp["q_b"],
            "wkv": jnp.concatenate([lp["k_w"], lp["v_w"]], axis=1).astype(bf),
            "bkv": jnp.concatenate([lp["k_b"], lp["v_b"]], axis=0),
            "o_w": lp["o_w"].astype(bf), "o_b": lp["o_b"],
            "ln2_g": lp["ln2_g"], "ln2_b": lp["ln2_b"],
            "w1": lp["w1"].astype(bf), "b1": lp["b1"],
            "w2": lp["w2"].astype(bf), "b2": lp["b2"],
        })
    return {
        "embed": embed,
        "layers": layers,
        "after_norm_g": raw["after_norm_g"],
        "after_norm_b": raw["after_norm_b"],
    }


# ----------------------------- main -----------------------------

if __name__ == "__main__":
    B, T, idim = 2, 34, 16          # xs: (batch, frames, feature_dim)
    D, heads, ff, nblocks = 32, 4, 64, 2

    key = jax.random.PRNGKey(0)
    kx, kp = jax.random.split(key)
    xs = jax.random.normal(kx, (B, T, idim), dtype=jnp.float32)
    lengths = jnp.array([34, 28], dtype=jnp.int32)
    masks = (jnp.arange(T)[None, None, :] < lengths[:, None, None])   # (B, 1, T) bool

    raw_params = init_params(kp, idim, D, heads, ff, nblocks)
    params = prepare_params(raw_params)        # one-time, outside the jitted path

    T_sub = ((T - 1) // 2 - 1) // 2            # after two stride-2 3x3 convs
    pe = positional_encoding(T_sub, D)         # precomputed, passed into the jit

    fwd = jax.jit(functools.partial(encoder_forward, heads=heads))
    out, out_masks = fwd(xs, masks, pe, params)
    jax.block_until_ready(out)

    assert out.shape == (B, T_sub, D), out.shape
    assert out_masks.shape == (B, 1, T_sub), out_masks.shape
    assert bool(jnp.all(jnp.isfinite(out)))
    print("KERNEL_OK")
</pallas_src>

<mosaic_0001>
module attributes {stable_mosaic.version = 11 : i64} {
  func.func @_k(%arg0: i32, %arg1: memref<8x128xf32, #tpu.memory_space<vmem>>, %arg2: memref<8x128xf32, #tpu.memory_space<vmem>>, %arg3: memref<8x128xf32, #tpu.memory_space<vmem>>) attributes {dimension_semantics = [#tpu.dimension_semantics<arbitrary>], iteration_bounds = array<i64: 2>, scalar_prefetch = 0 : i64, scratch_operands = 0 : i64, tpu.core_type = #tpu.core_type<tc>, window_params = [{transform_indices = @transform_0, window_bounds = array<i64: 8, 128>}, {pipeline_mode = #tpu.pipeline_mode<synchronous>, transform_indices = @transform_1, window_bounds = array<i64: 8, 128>}, {transform_indices = @transform_2, window_bounds = array<i64: 8, 128>}]} {
    %c0 = arith.constant 0 : index
    %c0_0 = arith.constant 0 : index
    %0 = vector.load %arg1[%c0, %c0_0] : memref<8x128xf32, #tpu.memory_space<vmem>>, vector<8x128xf32>
    %c0_1 = arith.constant 0 : index
    %c0_2 = arith.constant 0 : index
    %1 = vector.load %arg2[%c0_1, %c0_2] : memref<8x128xf32, #tpu.memory_space<vmem>>, vector<8x128xf32>
    %2 = arith.addf %0, %1 : vector<8x128xf32>
    %c0_3 = arith.constant 0 : index
    %c0_4 = arith.constant 0 : index
    %3 = vector.load %arg3[%c0_3, %c0_4] : memref<8x128xf32, #tpu.memory_space<vmem>>, vector<8x128xf32>
    tpu.vector_store %arg3[%c0_3, %c0_4], %2 {strides = array<i32>} : memref<8x128xf32, #tpu.memory_space<vmem>>, vector<8x128xf32>,
    return
  }
  func.func @transform_0(%arg0: i32) -> (i32, i32) {
    %c0_i32 = arith.constant 0 : i32
    %c0_i32_0 = arith.constant 0 : i32
    return %arg0, %c0_i32 : i32, i32
  }
  func.func @transform_1(%arg0: i32) -> (i32, i32) {
    %c0_i32 = arith.constant 0 : i32
    %c0_i32_0 = arith.constant 0 : i32
    %c0_i32_1 = arith.constant 0 : i32
    return %c0_i32, %c0_i32_0 : i32, i32
  }
  func.func @transform_2(%arg0: i32) -> (i32, i32) {
    %c0_i32 = arith.constant 0 : i32
    %c0_i32_0 = arith.constant 0 : i32
    return %arg0, %c0_i32 : i32, i32
  }
}

module attributes {stable_mosaic.version = 11 : i64} {
  func.func @_matmul_kernel(%arg0: i32, %arg1: memref<224x9xf32, #tpu.memory_space<vmem>>, %arg2: memref<9x32xbf16, #tpu.memory_space<vmem>>, %arg3: memref<1x32xf32, #tpu.memory_space<vmem>>, %arg4: memref<224x32xf32, #tpu.memory_space<vmem>>) attributes {dimension_semantics = [#tpu.dimension_semantics<parallel>], iteration_bounds = array<i64: 1>, scalar_prefetch = 0 : i64, scratch_operands = 0 : i64, tpu.core_type = #tpu.core_type<tc>, window_params = [{transform_indices = @transform_0, window_bounds = array<i64: 224, 9>}, {pipeline_mode = #tpu.pipeline_mode<synchronous>, transform_indices = @transform_1, window_bounds = array<i64: 9, 32>}, {pipeline_mode = #tpu.pipeline_mode<synchronous>, transform_indices = @transform_2, window_bounds = array<i64: 1, 32>}, {transform_indices = @transform_3, window_bounds = array<i64: 224, 32>}]} {
    %c0 = arith.constant 0 : index
    %c0_0 = arith.constant 0 : index
    %0 = vector.load %arg1[%c0, %c0_0] : memref<224x9xf32, #tpu.memory_space<vmem>>, vector<224x9xf32>
    %1 = arith.truncf %0 : vector<224x9xf32> to vector<224x9xbf16>
    %c0_1 = arith.constant 0 : index
    %c0_2 = arith.constant 0 : index
    %2 = vector.load %arg2[%c0_1, %c0_2] : memref<9x32xbf16, #tpu.memory_space<vmem>>, vector<9x32xbf16>
    %cst = arith.constant dense<0.000000e+00> : vector<224x32xf32>
    %3 = tpu.matmul %1, %2, %cst {dimension_numbers = #tpu.dot_dimension_numbers<[1], [0], [0], [1], [0, 0, 1, 1], [], []>} : vector<224x9xbf16>, vector<9x32xbf16>, vector<224x32xf32> -> vector<224x32xf32>
    %c0_3 = arith.constant 0 : index
    %c0_4 = arith.constant 0 : index
    %4 = vector.load %arg3[%c0_3, %c0_4] : memref<1x32xf32, #tpu.memory_space<vmem>>, vector<1x32xf32>
    %5 = vector.broadcast %4 : vector<1x32xf32> to vector<224x32xf32>
    %6 = arith.addf %3, %5 : vector<224x32xf32>
    %cst_5 = arith.constant 0.000000e+00 : f32
    %7 = vector.broadcast %cst_5 : f32 to vector<224x32xf32>
    %8 = arith.maximumf %6, %7 : vector<224x32xf32>
    %c0_6 = arith.constant 0 : index
    %c0_7 = arith.constant 0 : index
    %9 = vector.load %arg4[%c0_6, %c0_7] : memref<224x32xf32, #tpu.memory_space<vmem>>, vector<224x32xf32>
    tpu.vector_store %arg4[%c0_6, %c0_7], %8 {strides = array<i32>} : memref<224x32xf32, #tpu.memory_space<vmem>>, vector<224x32xf32>,
    return
  }
  func.func @transform_0(%arg0: i32) -> (i32, i32) {
    %c0_i32 = arith.constant 0 : i32
    %c0_i32_0 = arith.constant 0 : i32
    return %arg0, %c0_i32 : i32, i32
  }
  func.func @transform_1(%arg0: i32) -> (i32, i32) {
    %c0_i32 = arith.constant 0 : i32
    %c0_i32_0 = arith.constant 0 : i32
    %c0_i32_1 = arith.constant 0 : i32
    return %c0_i32, %c0_i32_0 : i32, i32
  }
  func.func @transform_2(%arg0: i32) -> (i32, i32) {
    %c0_i32 = arith.constant 0 : i32
    %c0_i32_0 = arith.constant 0 : i32
    %c0_i32_1 = arith.constant 0 : i32
    return %c0_i32, %c0_i32_0 : i32, i32
  }
  func.func @transform_3(%arg0: i32) -> (i32, i32) {
    %c0_i32 = arith.constant 0 : i32
    %c0_i32_0 = arith.constant 0 : i32
    return %arg0, %c0_i32 : i32, i32
  }
}

module attributes {stable_mosaic.version = 11 : i64} {
  func.func @_matmul_kernel(%arg0: i32, %arg1: memref<42x288xf32, #tpu.memory_space<vmem>>, %arg2: memref<288x32xbf16, #tpu.memory_space<vmem>>, %arg3: memref<1x32xf32, #tpu.memory_space<vmem>>, %arg4: memref<42x32xf32, #tpu.memory_space<vmem>>) attributes {dimension_semantics = [#tpu.dimension_semantics<parallel>], iteration_bounds = array<i64: 1>, scalar_prefetch = 0 : i64, scratch_operands = 0 : i64, tpu.core_type = #tpu.core_type<tc>, window_params = [{transform_indices = @transform_0, window_bounds = array<i64: 42, 288>}, {pipeline_mode = #tpu.pipeline_mode<synchronous>, transform_indices = @transform_1, window_bounds = array<i64: 288, 32>}, {pipeline_mode = #tpu.pipeline_mode<synchronous>, transform_indices = @transform_2, window_bounds = array<i64: 1, 32>}, {transform_indices = @transform_3, window_bounds = array<i64: 42, 32>}]} {
    %c0 = arith.constant 0 : index
    %c0_0 = arith.constant 0 : index
    %0 = vector.load %arg1[%c0, %c0_0] : memref<42x288xf32, #tpu.memory_space<vmem>>, vector<42x288xf32>
    %1 = arith.truncf %0 : vector<42x288xf32> to vector<42x288xbf16>
    %c0_1 = arith.constant 0 : index
    %c0_2 = arith.constant 0 : index
    %2 = vector.load %arg2[%c0_1, %c0_2] : memref<288x32xbf16, #tpu.memory_space<vmem>>, vector<288x32xbf16>
    %cst = arith.constant dense<0.000000e+00> : vector<42x32xf32>
    %3 = tpu.matmul %1, %2, %cst {dimension_numbers = #tpu.dot_dimension_numbers<[1], [0], [0], [1], [0, 0, 1, 1], [], []>} : vector<42x288xbf16>, vector<288x32xbf16>, vector<42x32xf32> -> vector<42x32xf32>
    %c0_3 = arith.constant 0 : index
    %c0_4 = arith.constant 0 : index
    %4 = vector.load %arg3[%c0_3, %c0_4] : memref<1x32xf32, #tpu.memory_space<vmem>>, vector<1x32xf32>
    %5 = vector.broadcast %4 : vector<1x32xf32> to vector<42x32xf32>
    %6 = arith.addf %3, %5 : vector<42x32xf32>
    %cst_5 = arith.constant 0.000000e+00 : f32
    %7 = vector.broadcast %cst_5 : f32 to vector<42x32xf32>
    %8 = arith.maximumf %6, %7 : vector<42x32xf32>
    %c0_6 = arith.constant 0 : index
    %c0_7 = arith.constant 0 : index
    %9 = vector.load %arg4[%c0_6, %c0_7] : memref<42x32xf32, #tpu.memory_space<vmem>>, vector<42x32xf32>
    tpu.vector_store %arg4[%c0_6, %c0_7], %8 {strides = array<i32>} : memref<42x32xf32, #tpu.memory_space<vmem>>, vector<42x32xf32>,
    return
  }
  func.func @transform_0(%arg0: i32) -> (i32, i32) {
    %c0_i32 = arith.constant 0 : i32
    %c0_i32_0 = arith.constant 0 : i32
    return %arg0, %c0_i32 : i32, i32
  }
  func.func @transform_1(%arg0: i32) -> (i32, i32) {
    %c0_i32 = arith.constant 0 : i32
    %c0_i32_0 = arith.constant 0 : i32
    %c0_i32_1 = arith.constant 0 : i32
    return %c0_i32, %c0_i32_0 : i32, i32
  }
  func.func @transform_2(%arg0: i32) -> (i32, i32) {
    %c0_i32 = arith.constant 0 : i32
    %c0_i32_0 = arith.constant 0 : i32
    %c0_i32_1 = arith.constant 0 : i32
    return %c0_i32, %c0_i32_0 : i32, i32
  }
  func.func @transform_3(%arg0: i32) -> (i32, i32) {
    %c0_i32 = arith.constant 0 : i32
    %c0_i32_0 = arith.constant 0 : i32
    return %arg0, %c0_i32 : i32, i32
  }
}

module attributes {stable_mosaic.version = 11 : i64} {
  func.func @_ln_qkv_kernel(%arg0: i32, %arg1: memref<14x32xf32, #tpu.memory_space<vmem>>, %arg2: memref<1x32xf32, #tpu.memory_space<vmem>>, %arg3: memref<1x32xf32, #tpu.memory_space<vmem>>, %arg4: memref<32x32xbf16, #tpu.memory_space<vmem>>, %arg5: memref<1x32xf32, #tpu.memory_space<vmem>>, %arg6: memref<32x64xbf16, #tpu.memory_space<vmem>>, %arg7: memref<1x64xf32, #tpu.memory_space<vmem>>, %arg8: memref<14x32xbf16, #tpu.memory_space<vmem>>, %arg9: memref<14x64xbf16, #tpu.memory_space<vmem>>) attributes {dimension_semantics = [#tpu.dimension_semantics<parallel>], iteration_bounds = array<i64: 1>, scalar_prefetch = 0 : i64, scratch_operands = 0 : i64, tpu.core_type = #tpu.core_type<tc>, window_params = [{transform_indices = @transform_0, window_bounds = array<i64: 14, 32>}, {pipeline_mode = #tpu.pipeline_mode<synchronous>, transform_indices = @transform_1, window_bounds = array<i64: 1, 32>}, {pipeline_mode = #tpu.pipeline_mode<synchronous>, transform_indices = @transform_2, window_bounds = array<i64: 1, 32>}, {pipeline_mode = #tpu.pipeline_mode<synchronous>, transform_indices = @transform_3, window_bounds = array<i64: 32, 32>}, {pipeline_mode = #tpu.pipeline_mode<synchronous>, transform_indices = @transform_4, window_bounds = array<i64: 1, 32>}, {pipeline_mode = #tpu.pipeline_mode<synchronous>, transform_indices = @transform_5, window_bounds = array<i64: 32, 64>}, {pipeline_mode = #tpu.pipeline_mode<synchronous>, transform_indices = @transform_6, window_bounds = array<i64: 1, 64>}, {transform_indices = @transform_7, window_bounds = array<i64: 14, 32>}, {transform_indices = @transform_8, window_bounds = array<i64: 14, 64>}]} {
    %c0 = arith.constant 0 : index
    %c0_0 = arith.constant 0 : index
    %0 = vector.load %arg1[%c0, %c0_0] : memref<14x32xf32, #tpu.memory_space<vmem>>, vector<14x32xf32>
    %cst = arith.constant dense<0.000000e+00> : vector<14xf32>
    %1 = vector.multi_reduction <add>, %0, %cst [1] : vector<14x32xf32> to vector<14xf32>
    %2 = vector.shape_cast %1 : vector<14xf32> to vector<14x1xf32>
    %cst_1 = arith.constant 3.200000e+01 : f32
    %3 = vector.broadcast %cst_1 : f32 to vector<14x1xf32>
    %4 = arith.divf %2, %3 : vector<14x1xf32>
    %5 = vector.broadcast %4 : vector<14x1xf32> to vector<14x32xf32>
    %6 = arith.subf %0, %5 : vector<14x32xf32>
    %7 = arith.mulf %6, %6 : vector<14x32xf32>
    %cst_2 = arith.constant dense<0.000000e+00> : vector<14xf32>
    %8 = vector.multi_reduction <add>, %7, %cst_2 [1] : vector<14x32xf32> to vector<14xf32>
    %9 = vector.shape_cast %8 : vector<14xf32> to vector<14x1xf32>
    %cst_3 = arith.constant 3.200000e+01 : f32
    %10 = vector.broadcast %cst_3 : f32 to vector<14x1xf32>
    %11 = arith.divf %9, %10 : vector<14x1xf32>
    %cst_4 = arith.constant 9.99999996E-13 : f32
    %12 = vector.broadcast %cst_4 : f32 to vector<14x1xf32>
    %13 = arith.addf %11, %12 : vector<14x1xf32>
    %14 = math.rsqrt %13 : vector<14x1xf32>
    %15 = vector.broadcast %14 : vector<14x1xf32> to vector<14x32xf32>
    %16 = arith.mulf %6, %15 : vector<14x32xf32>
    %c0_5 = arith.constant 0 : index
    %c0_6 = arith.constant 0 : index
    %17 = vector.load %arg2[%c0_5, %c0_6] : memref<1x32xf32, #tpu.memory_space<vmem>>, vector<1x32xf32>
    %18 = vector.broadcast %17 : vector<1x32xf32> to vector<14x32xf32>
    %19 = arith.mulf %16, %18 : vector<14x32xf32>
    %c0_7 = arith.constant 0 : index
    %c0_8 = arith.constant 0 : index
    %20 = vector.load %arg3[%c0_7, %c0_8] : memref<1x32xf32, #tpu.memory_space<vmem>>, vector<1x32xf32>
    %21 = vector.broadcast %20 : vector<1x32xf32> to vector<14x32xf32>
    %22 = arith.addf %19, %21 : vector<14x32xf32>
    %23 = arith.truncf %22 : vector<14x32xf32> to vector<14x32xbf16>
    %c0_9 = arith.constant 0 : index
    %c0_10 = arith.constant 0 : index
    %24 = vector.load %arg4[%c0_9, %c0_10] : memref<32x32xbf16, #tpu.memory_space<vmem>>, vector<32x32xbf16>
    %cst_11 = arith.constant dense<0.000000e+00> : vector<14x32xf32>
    %25 = tpu.matmul %23, %24, %cst_11 {dimension_numbers = #tpu.dot_dimension_numbers<[1], [0], [0], [1], [0, 0, 1, 1], [], []>} : vector<14x32xbf16>, vector<32x32xbf16>, vector<14x32xf32> -> vector<14x32xf32>
    %c0_12 = arith.constant 0 : index
    %c0_13 = arith.constant 0 : index
    %26 = vector.load %arg5[%c0_12, %c0_13] : memref<1x32xf32, #tpu.memory_space<vmem>>, vector<1x32xf32>
    %27 = vector.broadcast %26 : vector<1x32xf32> to vector<14x32xf32>
    %28 = arith.addf %25, %27 : vector<14x32xf32>
    %c0_14 = arith.constant 0 : index
    %c0_15 = arith.constant 0 : index
    %29 = vector.load %arg6[%c0_14, %c0_15] : memref<32x64xbf16, #tpu.memory_space<vmem>>, vector<32x64xbf16>
    %cst_16 = arith.constant dense<0.000000e+00> : vector<14x64xf32>
    %30 = tpu.matmul %23, %29, %cst_16 {dimension_numbers = #tpu.dot_dimension_numbers<[1], [0], [0], [1], [0, 0, 1, 1], [], []>} : vector<14x32xbf16>, vector<32x64xbf16>, vector<14x64xf32> -> vector<14x64xf32>
    %c0_17 = arith.constant 0 : index
    %c0_18 = arith.constant 0 : index
    %31 = vector.load %arg7[%c0_17, %c0_18] : memref<1x64xf32, #tpu.memory_space<vmem>>, vector<1x64xf32>
    %32 = vector.broadcast %31 : vector<1x64xf32> to vector<14x64xf32>
    %33 = arith.addf %30, %32 : vector<14x64xf32>
    %34 = arith.truncf %28 : vector<14x32xf32> to vector<14x32xbf16>
    %c0_19 = arith.constant 0 : index
    %c0_20 = arith.constant 0 : index
    %35 = vector.load %arg8[%c0_19, %c0_20] : memref<14x32xbf16, #tpu.memory_space<vmem>>, vector<14x32xbf16>
    tpu.vector_store %arg8[%c0_19, %c0_20], %34 {strides = array<i32>} : memref<14x32xbf16, #tpu.memory_space<vmem>>, vector<14x32xbf16>,
    %36 = arith.truncf %33 : vector<14x64xf32> to vector<14x64xbf16>
    %c0_21 = arith.constant 0 : index
    %c0_22 = arith.constant 0 : index
    %37 = vector.load %arg9[%c0_21, %c0_22] : memref<14x64xbf16, #tpu.memory_space<vmem>>, vector<14x64xbf16>
    tpu.vector_store %arg9[%c0_21, %c0_22], %36 {strides = array<i32>} : memref<14x64xbf16, #tpu.memory_space<vmem>>, vector<14x64xbf16>,
    return
  }
  func.func @transform_0(%arg0: i32) -> (i32, i32) {
    %c0_i32 = arith.constant 0 : i32
    %c0_i32_0 = arith.constant 0 : i32
    return %arg0, %c0_i32 : i32, i32
  }
  func.func @transform_1(%arg0: i32) -> (i32, i32) {
    %c0_i32 = arith.constant 0 : i32
    %c0_i32_0 = arith.constant 0 : i32
    %c0_i32_1 = arith.constant 0 : i32
    return %c0_i32, %c0_i32_0 : i32, i32
  }
  func.func @transform_2(%arg0: i32) -> (i32, i32) {
    %c0_i32 = arith.constant 0 : i32
    %c0_i32_0 = arith.constant 0 : i32
    %c0_i32_1 = arith.constant 0 : i32
    return %c0_i32, %c0_i32_0 : i32, i32
  }
  func.func @transform_3(%arg0: i32) -> (i32, i32) {
    %c0_i32 = arith.constant 0 : i32
    %c0_i32_0 = arith.constant 0 : i32
    %c0_i32_1 = arith.constant 0 : i32
    return %c0_i32, %c0_i32_0 : i32, i32
  }
  func.func @transform_4(%arg0: i32) -> (i32, i32) {
    %c0_i32 = arith.constant 0 : i32
    %c0_i32_0 = arith.constant 0 : i32
    %c0_i32_1 = arith.constant 0 : i32
    return %c0_i32, %c0_i32_0 : i32, i32
  }
  func.func @transform_5(%arg0: i32) -> (i32, i32) {
    %c0_i32 = arith.constant 0 : i32
    %c0_i32_0 = arith.constant 0 : i32
    %c0_i32_1 = arith.constant 0 : i32
    return %c0_i32, %c0_i32_0 : i32, i32
  }
  func.func @transform_6(%arg0: i32) -> (i32, i32) {
    %c0_i32 = arith.constant 0 : i32
    %c0_i32_0 = arith.constant 0 : i32
    %c0_i32_1 = arith.constant 0 : i32
    return %c0_i32, %c0_i32_0 : i32, i32
  }
  func.func @transform_7(%arg0: i32) -> (i32, i32) {
    %c0_i32 = arith.constant 0 : i32
    %c0_i32_0 = arith.constant 0 : i32
    return %arg0, %c0_i32 : i32, i32
  }
  func.func @transform_8(%arg0: i32) -> (i32, i32) {
    %c0_i32 = arith.constant 0 : i32
    %c0_i32_0 = arith.constant 0 : i32
    return %arg0, %c0_i32 : i32, i32
  }
}

module attributes {stable_mosaic.version = 11 : i64} {
  func.func @_embed_kernel(%arg0: i32, %arg1: memref<1x7x96xf32, #tpu.memory_space<vmem>>, %arg2: memref<96x32xbf16, #tpu.memory_space<vmem>>, %arg3: memref<1x32xf32, #tpu.memory_space<vmem>>, %arg4: memref<7x32xf32, #tpu.memory_space<vmem>>, %arg5: memref<1x7x32xf32, #tpu.memory_space<vmem>>) attributes {dimension_semantics = [#tpu.dimension_semantics<parallel>], iteration_bounds = array<i64: 2>, scalar_prefetch = 0 : i64, scratch_operands = 0 : i64, tpu.core_type = #tpu.core_type<tc>, window_params = [{transform_indices = @transform_0, window_bounds = array<i64: 1, 7, 96>}, {pipeline_mode = #tpu.pipeline_mode<synchronous>, transform_indices = @transform_1, window_bounds = array<i64: 96, 32>}, {pipeline_mode = #tpu.pipeline_mode<synchronous>, transform_indices = @transform_2, window_bounds = array<i64: 1, 32>}, {pipeline_mode = #tpu.pipeline_mode<synchronous>, transform_indices = @transform_3, window_bounds = array<i64: 7, 32>}, {transform_indices = @transform_4, window_bounds = array<i64: 1, 7, 32>}]} {
    %c0 = arith.constant 0 : index
    %c0_0 = arith.constant 0 : index
    %c0_1 = arith.constant 0 : index
    %0 = vector.load %arg1[%c0, %c0_0, %c0_1] : memref<1x7x96xf32, #tpu.memory_space<vmem>>, vector<1x7x96xf32>
    %1 = vector.shape_cast %0 : vector<1x7x96xf32> to vector<7x96xf32>
    %2 = arith.truncf %1 : vector<7x96xf32> to vector<7x96xbf16>
    %c0_2 = arith.constant 0 : index
    %c0_3 = arith.constant 0 : index
    %3 = vector.load %arg2[%c0_2, %c0_3] : memref<96x32xbf16, #tpu.memory_space<vmem>>, vector<96x32xbf16>
    %cst = arith.constant dense<0.000000e+00> : vector<7x32xf32>
    %4 = tpu.matmul %2, %3, %cst {dimension_numbers = #tpu.dot_dimension_numbers<[1], [0], [0], [1], [0, 0, 1, 1], [], []>} : vector<7x96xbf16>, vector<96x32xbf16>, vector<7x32xf32> -> vector<7x32xf32>
    %c0_4 = arith.constant 0 : index
    %c0_5 = arith.constant 0 : index
    %5 = vector.load %arg3[%c0_4, %c0_5] : memref<1x32xf32, #tpu.memory_space<vmem>>, vector<1x32xf32>
    %6 = vector.broadcast %5 : vector<1x32xf32> to vector<7x32xf32>
    %7 = arith.addf %4, %6 : vector<7x32xf32>
    %cst_6 = arith.constant 5.65685415 : f32
    %8 = vector.broadcast %cst_6 : f32 to vector<7x32xf32>
    %9 = arith.mulf %7, %8 : vector<7x32xf32>
    %c0_7 = arith.constant 0 : index
    %c0_8 = arith.constant 0 : index
    %10 = vector.load %arg4[%c0_7, %c0_8] : memref<7x32xf32, #tpu.memory_space<vmem>>, vector<7x32xf32>
    %11 = arith.addf %9, %10 : vector<7x32xf32>
    %c0_9 = arith.constant 0 : index
    %c0_10 = arith.constant 0 : index
    %c0_11 = arith.constant 0 : index
    %12 = vector.load %arg5[%c0_9, %c0_10, %c0_11] : memref<1x7x32xf32, #tpu.memory_space<vmem>>, vector<1x7x32xf32>
    %13 = vector.shape_cast %12 : vector<1x7x32xf32> to vector<7x32xf32>
    %14 = vector.shape_cast %11 : vector<7x32xf32> to vector<1x7x32xf32>
    tpu.vector_store %arg5[%c0_9, %c0_10, %c0_11], %14 {strides = array<i32>} : memref<1x7x32xf32, #tpu.memory_space<vmem>>, vector<1x7x32xf32>,
    return
  }
  func.func @transform_0(%arg0: i32) -> (i32, i32, i32) {
    %c0_i32 = arith.constant 0 : i32
    %c0_i32_0 = arith.constant 0 : i32
    %c0_i32_1 = arith.constant 0 : i32
    return %arg0, %c0_i32, %c0_i32_0 : i32, i32, i32
  }
  func.func @transform_1(%arg0: i32) -> (i32, i32) {
    %c0_i32 = arith.constant 0 : i32
    %c0_i32_0 = arith.constant 0 : i32
    %c0_i32_1 = arith.constant 0 : i32
    return %c0_i32, %c0_i32_0 : i32, i32
  }
  func.func @transform_2(%arg0: i32) -> (i32, i32) {
    %c0_i32 = arith.constant 0 : i32
    %c0_i32_0 = arith.constant 0 : i32
    %c0_i32_1 = arith.constant 0 : i32
    return %c0_i32, %c0_i32_0 : i32, i32
  }
  func.func @transform_3(%arg0: i32) -> (i32, i32) {
    %c0_i32 = arith.constant 0 : i32
    %c0_i32_0 = arith.constant 0 : i32
    %c0_i32_1 = arith.constant 0 : i32
    return %c0_i32, %c0_i32_0 : i32, i32
  }
  func.func @transform_4(%arg0: i32) -> (i32, i32, i32) {
    %c0_i32 = arith.constant 0 : i32
    %c0_i32_0 = arith.constant 0 : i32
    %c0_i32_1 = arith.constant 0 : i32
    return %arg0, %c0_i32, %c0_i32_0 : i32, i32, i32
  }
}

module attributes {stable_mosaic.version = 11 : i64} {
  func.func @_ffn_kernel(%arg0: i32, %arg1: memref<14x32xf32, #tpu.memory_space<vmem>>, %arg2: memref<1x32xf32, #tpu.memory_space<vmem>>, %arg3: memref<1x32xf32, #tpu.memory_space<vmem>>, %arg4: memref<32x64xbf16, #tpu.memory_space<vmem>>, %arg5: memref<1x64xf32, #tpu.memory_space<vmem>>, %arg6: memref<64x32xbf16, #tpu.memory_space<vmem>>, %arg7: memref<1x32xf32, #tpu.memory_space<vmem>>, %arg8: memref<14x32xf32, #tpu.memory_space<vmem>>) attributes {dimension_semantics = [#tpu.dimension_semantics<parallel>], iteration_bounds = array<i64: 1>, scalar_prefetch = 0 : i64, scratch_operands = 0 : i64, tpu.core_type = #tpu.core_type<tc>, window_params = [{transform_indices = @transform_0, window_bounds = array<i64: 14, 32>}, {pipeline_mode = #tpu.pipeline_mode<synchronous>, transform_indices = @transform_1, window_bounds = array<i64: 1, 32>}, {pipeline_mode = #tpu.pipeline_mode<synchronous>, transform_indices = @transform_2, window_bounds = array<i64: 1, 32>}, {pipeline_mode = #tpu.pipeline_mode<synchronous>, transform_indices = @transform_3, window_bounds = array<i64: 32, 64>}, {pipeline_mode = #tpu.pipeline_mode<synchronous>, transform_indices = @transform_4, window_bounds = array<i64: 1, 64>}, {pipeline_mode = #tpu.pipeline_mode<synchronous>, transform_indices = @transform_5, window_bounds = array<i64: 64, 32>}, {pipeline_mode = #tpu.pipeline_mode<synchronous>, transform_indices = @transform_6, window_bounds = array<i64: 1, 32>}, {transform_indices = @transform_7, window_bounds = array<i64: 14, 32>}]} {
    %c0 = arith.constant 0 : index
    %c0_0 = arith.constant 0 : index
    %0 = vector.load %arg1[%c0, %c0_0] : memref<14x32xf32, #tpu.memory_space<vmem>>, vector<14x32xf32>
    %cst = arith.constant dense<0.000000e+00> : vector<14xf32>
    %1 = vector.multi_reduction <add>, %0, %cst [1] : vector<14x32xf32> to vector<14xf32>
    %2 = vector.shape_cast %1 : vector<14xf32> to vector<14x1xf32>
    %cst_1 = arith.constant 3.200000e+01 : f32
    %3 = vector.broadcast %cst_1 : f32 to vector<14x1xf32>
    %4 = arith.divf %2, %3 : vector<14x1xf32>
    %5 = vector.broadcast %4 : vector<14x1xf32> to vector<14x32xf32>
    %6 = arith.subf %0, %5 : vector<14x32xf32>
    %7 = arith.mulf %6, %6 : vector<14x32xf32>
    %cst_2 = arith.constant dense<0.000000e+00> : vector<14xf32>
    %8 = vector.multi_reduction <add>, %7, %cst_2 [1] : vector<14x32xf32> to vector<14xf32>
    %9 = vector.shape_cast %8 : vector<14xf32> to vector<14x1xf32>
    %cst_3 = arith.constant 3.200000e+01 : f32
    %10 = vector.broadcast %cst_3 : f32 to vector<14x1xf32>
    %11 = arith.divf %9, %10 : vector<14x1xf32>
    %cst_4 = arith.constant 9.99999996E-13 : f32
    %12 = vector.broadcast %cst_4 : f32 to vector<14x1xf32>
    %13 = arith.addf %11, %12 : vector<14x1xf32>
    %14 = math.rsqrt %13 : vector<14x1xf32>
    %15 = vector.broadcast %14 : vector<14x1xf32> to vector<14x32xf32>
    %16 = arith.mulf %6, %15 : vector<14x32xf32>
    %c0_5 = arith.constant 0 : index
    %c0_6 = arith.constant 0 : index
    %17 = vector.load %arg2[%c0_5, %c0_6] : memref<1x32xf32, #tpu.memory_space<vmem>>, vector<1x32xf32>
    %18 = vector.broadcast %17 : vector<1x32xf32> to vector<14x32xf32>
    %19 = arith.mulf %16, %18 : vector<14x32xf32>
    %c0_7 = arith.constant 0 : index
    %c0_8 = arith.constant 0 : index
    %20 = vector.load %arg3[%c0_7, %c0_8] : memref<1x32xf32, #tpu.memory_space<vmem>>, vector<1x32xf32>
    %21 = vector.broadcast %20 : vector<1x32xf32> to vector<14x32xf32>
    %22 = arith.addf %19, %21 : vector<14x32xf32>
    %23 = arith.truncf %22 : vector<14x32xf32> to vector<14x32xbf16>
    %c0_9 = arith.constant 0 : index
    %c0_10 = arith.constant 0 : index
    %24 = vector.load %arg4[%c0_9, %c0_10] : memref<32x64xbf16, #tpu.memory_space<vmem>>, vector<32x64xbf16>
    %cst_11 = arith.constant dense<0.000000e+00> : vector<14x64xf32>
    %25 = tpu.matmul %23, %24, %cst_11 {dimension_numbers = #tpu.dot_dimension_numbers<[1], [0], [0], [1], [0, 0, 1, 1], [], []>} : vector<14x32xbf16>, vector<32x64xbf16>, vector<14x64xf32> -> vector<14x64xf32>
    %c0_12 = arith.constant 0 : index
    %c0_13 = arith.constant 0 : index
    %26 = vector.load %arg5[%c0_12, %c0_13] : memref<1x64xf32, #tpu.memory_space<vmem>>, vector<1x64xf32>
    %27 = vector.broadcast %26 : vector<1x64xf32> to vector<14x64xf32>
    %28 = arith.addf %25, %27 : vector<14x64xf32>
    %cst_14 = arith.constant 0.000000e+00 : f32
    %29 = vector.broadcast %cst_14 : f32 to vector<14x64xf32>
    %30 = arith.maximumf %28, %29 : vector<14x64xf32>
    %31 = arith.truncf %30 : vector<14x64xf32> to vector<14x64xbf16>
    %c0_15 = arith.constant 0 : index
    %c0_16 = arith.constant 0 : index
    %32 = vector.load %arg6[%c0_15, %c0_16] : memref<64x32xbf16, #tpu.memory_space<vmem>>, vector<64x32xbf16>
    %cst_17 = arith.constant dense<0.000000e+00> : vector<14x32xf32>
    %33 = tpu.matmul %31, %32, %cst_17 {dimension_numbers = #tpu.dot_dimension_numbers<[1], [0], [0], [1], [0, 0, 1, 1], [], []>} : vector<14x64xbf16>, vector<64x32xbf16>, vector<14x32xf32> -> vector<14x32xf32>
    %c0_18 = arith.constant 0 : index
    %c0_19 = arith.constant 0 : index
    %34 = vector.load %arg7[%c0_18, %c0_19] : memref<1x32xf32, #tpu.memory_space<vmem>>, vector<1x32xf32>
    %35 = vector.broadcast %34 : vector<1x32xf32> to vector<14x32xf32>
    %36 = arith.addf %33, %35 : vector<14x32xf32>
    %37 = arith.addf %0, %36 : vector<14x32xf32>
    %c0_20 = arith.constant 0 : index
    %c0_21 = arith.constant 0 : index
    %38 = vector.load %arg8[%c0_20, %c0_21] : memref<14x32xf32, #tpu.memory_space<vmem>>, vector<14x32xf32>
    tpu.vector_store %arg8[%c0_20, %c0_21], %37 {strides = array<i32>} : memref<14x32xf32, #tpu.memory_space<vmem>>, vector<14x32xf32>,
    return
  }
  func.func @transform_0(%arg0: i32) -> (i32, i32) {
    %c0_i32 = arith.constant 0 : i32
    %c0_i32_0 = arith.constant 0 : i32
    return %arg0, %c0_i32 : i32, i32
  }
  func.func @transform_1(%arg0: i32) -> (i32, i32) {
    %c0_i32 = arith.constant 0 : i32
    %c0_i32_0 = arith.constant 0 : i32
    %c0_i32_1 = arith.constant 0 : i32
    return %c0_i32, %c0_i32_0 : i32, i32
  }
  func.func @transform_2(%arg0: i32) -> (i32, i32) {
    %c0_i32 = arith.constant 0 : i32
    %c0_i32_0 = arith.constant 0 : i32
    %c0_i32_1 = arith.constant 0 : i32
    return %c0_i32, %c0_i32_0 : i32, i32
  }
  func.func @transform_3(%arg0: i32) -> (i32, i32) {
    %c0_i32 = arith.constant 0 : i32
    %c0_i32_0 = arith.constant 0 : i32
    %c0_i32_1 = arith.constant 0 : i32
    return %c0_i32, %c0_i32_0 : i32, i32
  }
  func.func @transform_4(%arg0: i32) -> (i32, i32) {
    %c0_i32 = arith.constant 0 : i32
    %c0_i32_0 = arith.constant 0 : i32
    %c0_i32_1 = arith.constant 0 : i32
    return %c0_i32, %c0_i32_0 : i32, i32
  }
  func.func @transform_5(%arg0: i32) -> (i32, i32) {
    %c0_i32 = arith.constant 0 : i32
    %c0_i32_0 = arith.constant 0 : i32
    %c0_i32_1 = arith.constant 0 : i32
    return %c0_i32, %c0_i32_0 : i32, i32
  }
  func.func @transform_6(%arg0: i32) -> (i32, i32) {
    %c0_i32 = arith.constant 0 : i32
    %c0_i32_0 = arith.constant 0 : i32
    %c0_i32_1 = arith.constant 0 : i32
    return %c0_i32, %c0_i32_0 : i32, i32
  }
  func.func @transform_7(%arg0: i32) -> (i32, i32) {
    %c0_i32 = arith.constant 0 : i32
    %c0_i32_0 = arith.constant 0 : i32
    return %arg0, %c0_i32 : i32, i32
  }
}

module attributes {stable_mosaic.version = 11 : i64} {
  func.func @_attn_kernel(%arg0: i32, %arg1: i32, %arg2: memref<1x7x32xbf16, #tpu.memory_space<vmem>>, %arg3: memref<1x7x64xbf16, #tpu.memory_space<vmem>>, %arg4: memref<1x1x7xf32, #tpu.memory_space<vmem>>, %arg5: memref<1x7x32xf32, #tpu.memory_space<vmem>>, %arg6: memref<32x32xbf16, #tpu.memory_space<vmem>>, %arg7: memref<1x32xf32, #tpu.memory_space<vmem>>, %arg8: memref<1x7x32xf32, #tpu.memory_space<vmem>>, %arg9: memref<7x32xf32, #tpu.memory_space<vmem>>) attributes {dimension_semantics = [#tpu.dimension_semantics<parallel>, #tpu.dimension_semantics<parallel>], iteration_bounds = array<i64: 2, 1>, scalar_prefetch = 0 : i64, scratch_operands = 1 : i64, tpu.core_type = #tpu.core_type<tc>, window_params = [{transform_indices = @transform_0, window_bounds = array<i64: 1, 7, 32>}, {transform_indices = @transform_1, window_bounds = array<i64: 1, 7, 64>}, {transform_indices = @transform_2, window_bounds = array<i64: 1, 1, 7>}, {transform_indices = @transform_3, window_bounds = array<i64: 1, 7, 32>}, {pipeline_mode = #tpu.pipeline_mode<synchronous>, transform_indices = @transform_4, window_bounds = array<i64: 32, 32>}, {pipeline_mode = #tpu.pipeline_mode<synchronous>, transform_indices = @transform_5, window_bounds = array<i64: 1, 32>}, {transform_indices = @transform_6, window_bounds = array<i64: 1, 7, 32>}]} {
    %c0 = arith.constant 0 : index
    %c0_0 = arith.constant 0 : index
    %c0_1 = arith.constant 0 : index
    %0 = vector.load %arg2[%c0, %c0_0, %c0_1] : memref<1x7x32xbf16, #tpu.memory_space<vmem>>, vector<1x7x32xbf16>
    %1 = vector.shape_cast %0 : vector<1x7x32xbf16> to vector<7x32xbf16>
    %c0_2 = arith.constant 0 : index
    %c0_3 = arith.constant 0 : index
    %c0_4 = arith.constant 0 : index
    %2 = vector.load %arg3[%c0_2, %c0_3, %c0_4] : memref<1x7x64xbf16, #tpu.memory_space<vmem>>, vector<1x7x64xbf16>
    %3 = vector.shape_cast %2 : vector<1x7x64xbf16> to vector<7x64xbf16>
    %c0_5 = arith.constant 0 : index
    %c0_6 = arith.constant 0 : index
    %c0_7 = arith.constant 0 : index
    %4 = vector.load %arg4[%c0_5, %c0_6, %c0_7] : memref<1x1x7xf32, #tpu.memory_space<vmem>>, vector<1x1x7xf32>
    %5 = vector.shape_cast %4 : vector<1x1x7xf32> to vector<1x7xf32>
    %cst = arith.constant 5.000000e-01 : f32
    %6 = vector.broadcast %cst : f32 to vector<1x7xf32>
    %7 = arith.cmpf ogt, %5, %6 : vector<1x7xf32>
    %8 = vector.extract_strided_slice %1 {offsets = [0, 0], sizes = [7, 8], strides = [1, 1]} : vector<7x32xbf16> to vector<7x8xbf16>
    %9 = vector.extract_strided_slice %3 {offsets = [0, 0], sizes = [7, 8], strides = [1, 1]} : vector<7x64xbf16> to vector<7x8xbf16>
    %10 = vector.extract_strided_slice %3 {offsets = [0, 32], sizes = [7, 8], strides = [1, 1]} : vector<7x64xbf16> to vector<7x8xbf16>
    %cst_8 = arith.constant dense<0.000000e+00> : vector<7x7xf32>
    %11 = tpu.matmul %8, %9, %cst_8 {dimension_numbers = #tpu.dot_dimension_numbers<[1], [1], [0], [0], [0, 0, 1, 0], [], []>} : vector<7x8xbf16>, vector<7x8xbf16>, vector<7x7xf32> -> vector<7x7xf32>
    %cst_9 = arith.constant 0.353553385 : f32
    %12 = vector.broadcast %cst_9 : f32 to vector<7x7xf32>
    %13 = arith.mulf %11, %12 : vector<7x7xf32>
    %cst_10 = arith.constant -3.40282347E+38 : f32
    %14 = vector.shape_cast %7 : vector<1x7xi1> to vector<1x7xi1>
    %15 = vector.broadcast %14 : vector<1x7xi1> to vector<7x7xi1>
    %16 = vector.broadcast %cst_10 : f32 to vector<7x7xf32>
    %17 = arith.select %15, %13, %16 : vector<7x7xi1>, vector<7x7xf32>
    %cst_11 = arith.constant dense<0xFF800000> : vector<7xf32>
    %18 = vector.multi_reduction <maximumf>, %17, %cst_11 [1] : vector<7x7xf32> to vector<7xf32>
    %19 = vector.shape_cast %18 : vector<7xf32> to vector<7x1xf32>
    %20 = vector.broadcast %19 : vector<7x1xf32> to vector<7x7xf32>
    %21 = arith.subf %17, %20 : vector<7x7xf32>
    %22 = math.exp %21 : vector<7x7xf32>
    %cst_12 = arith.constant dense<0.000000e+00> : vector<7xf32>
    %23 = vector.multi_reduction <add>, %22, %cst_12 [1] : vector<7x7xf32> to vector<7xf32>
    %24 = vector.shape_cast %23 : vector<7xf32> to vector<7x1xf32>
    %25 = tpu.reciprocal %24 {approx = true} : vector<7x1xf32> -> vector<7x1xf32>
    %26 = vector.broadcast %25 : vector<7x1xf32> to vector<7x7xf32>
    %27 = arith.mulf %22, %26 : vector<7x7xf32>
    %cst_13 = arith.constant 0.000000e+00 : f32
    %28 = vector.shape_cast %7 : vector<1x7xi1> to vector<1x7xi1>
    %29 = vector.broadcast %28 : vector<1x7xi1> to vector<7x7xi1>
    %30 = vector.broadcast %cst_13 : f32 to vector<7x7xf32>
    %31 = arith.select %29, %27, %30 : vector<7x7xi1>, vector<7x7xf32>
    %32 = arith.truncf %31 : vector<7x7xf32> to vector<7x7xbf16>
    %cst_14 = arith.constant dense<0.000000e+00> : vector<7x8xf32>
    %33 = tpu.matmul %32, %10, %cst_14 {dimension_numbers = #tpu.dot_dimension_numbers<[1], [0], [0], [1], [0, 0, 1, 1], [], []>} : vector<7x7xbf16>, vector<7x8xbf16>, vector<7x8xf32> -> vector<7x8xf32>
    %c0_15 = arith.constant 0 : index
    %c0_16 = arith.constant 0 : index
    %34 = vector.load %arg9[%c0_15, %c0_16] : memref<7x32xf32, #tpu.memory_space<vmem>>, vector<7x8xf32>
    tpu.vector_store %arg9[%c0_15, %c0_16], %33 {strides = array<i32>} : memref<7x32xf32, #tpu.memory_space<vmem>>, vector<7x8xf32>,
    %35 = vector.extract_strided_slice %1 {offsets = [0, 8], sizes = [7, 8], strides = [1, 1]} : vector<7x32xbf16> to vector<7x8xbf16>
    %36 = vector.extract_strided_slice %3 {offsets = [0, 8], sizes = [7, 8], strides = [1, 1]} : vector<7x64xbf16> to vector<7x8xbf16>
    %37 = vector.extract_strided_slice %3 {offsets = [0, 40], sizes = [7, 8], strides = [1, 1]} : vector<7x64xbf16> to vector<7x8xbf16>
    %cst_17 = arith.constant dense<0.000000e+00> : vector<7x7xf32>
    %38 = tpu.matmul %35, %36, %cst_17 {dimension_numbers = #tpu.dot_dimension_numbers<[1], [1], [0], [0], [0, 0, 1, 0], [], []>} : vector<7x8xbf16>, vector<7x8xbf16>, vector<7x7xf32> -> vector<7x7xf32>
    %cst_18 = arith.constant 0.353553385 : f32
    %39 = vector.broadcast %cst_18 : f32 to vector<7x7xf32>
    %40 = arith.mulf %38, %39 : vector<7x7xf32>
    %cst_19 = arith.constant -3.40282347E+38 : f32
    %41 = vector.shape_cast %7 : vector<1x7xi1> to vector<1x7xi1>
    %42 = vector.broadcast %41 : vector<1x7xi1> to vector<7x7xi1>
    %43 = vector.broadcast %cst_19 : f32 to vector<7x7xf32>
    %44 = arith.select %42, %40, %43 : vector<7x7xi1>, vector<7x7xf32>
    %cst_20 = arith.constant dense<0xFF800000> : vector<7xf32>
    %45 = vector.multi_reduction <maximumf>, %44, %cst_20 [1] : vector<7x7xf32> to vector<7xf32>
    %46 = vector.shape_cast %45 : vector<7xf32> to vector<7x1xf32>
    %47 = vector.broadcast %46 : vector<7x1xf32> to vector<7x7xf32>
    %48 = arith.subf %44, %47 : vector<7x7xf32>
    %49 = math.exp %48 : vector<7x7xf32>
    %cst_21 = arith.constant dense<0.000000e+00> : vector<7xf32>
    %50 = vector.multi_reduction <add>, %49, %cst_21 [1] : vector<7x7xf32> to vector<7xf32>
    %51 = vector.shape_cast %50 : vector<7xf32> to vector<7x1xf32>
    %52 = tpu.reciprocal %51 {approx = true} : vector<7x1xf32> -> vector<7x1xf32>
    %53 = vector.broadcast %52 : vector<7x1xf32> to vector<7x7xf32>
    %54 = arith.mulf %49, %53 : vector<7x7xf32>
    %cst_22 = arith.constant 0.000000e+00 : f32
    %55 = vector.shape_cast %7 : vector<1x7xi1> to vector<1x7xi1>
    %56 = vector.broadcast %55 : vector<1x7xi1> to vector<7x7xi1>
    %57 = vector.broadcast %cst_22 : f32 to vector<7x7xf32>
    %58 = arith.select %56, %54, %57 : vector<7x7xi1>, vector<7x7xf32>
    %59 = arith.truncf %58 : vector<7x7xf32> to vector<7x7xbf16>
    %cst_23 = arith.constant dense<0.000000e+00> : vector<7x8xf32>
    %60 = tpu.matmul %59, %37, %cst_23 {dimension_numbers = #tpu.dot_dimension_numbers<[1], [0], [0], [1], [0, 0, 1, 1], [], []>} : vector<7x7xbf16>, vector<7x8xbf16>, vector<7x8xf32> -> vector<7x8xf32>
    %c0_24 = arith.constant 0 : index
    %c8 = arith.constant 8 : index
    %61 = vector.load %arg9[%c0_24, %c8] : memref<7x32xf32, #tpu.memory_space<vmem>>, vector<7x8xf32>
    tpu.vector_store %arg9[%c0_24, %c8], %60 {strides = array<i32>} : memref<7x32xf32, #tpu.memory_space<vmem>>, vector<7x8xf32>,
    %62 = vector.extract_strided_slice %1 {offsets = [0, 16], sizes = [7, 8], strides = [1, 1]} : vector<7x32xbf16> to vector<7x8xbf16>
    %63 = vector.extract_strided_slice %3 {offsets = [0, 16], sizes = [7, 8], strides = [1, 1]} : vector<7x64xbf16> to vector<7x8xbf16>
    %64 = vector.extract_strided_slice %3 {offsets = [0, 48], sizes = [7, 8], strides = [1, 1]} : vector<7x64xbf16> to vector<7x8xbf16>
    %cst_25 = arith.constant dense<0.000000e+00> : vector<7x7xf32>
    %65 = tpu.matmul %62, %63, %cst_25 {dimension_numbers = #tpu.dot_dimension_numbers<[1], [1], [0], [0], [0, 0, 1, 0], [], []>} : vector<7x8xbf16>, vector<7x8xbf16>, vector<7x7xf32> -> vector<7x7xf32>
    %cst_26 = arith.constant 0.353553385 : f32
    %66 = vector.broadcast %cst_26 : f32 to vector<7x7xf32>
    %67 = arith.mulf %65, %66 : vector<7x7xf32>
    %cst_27 = arith.constant -3.40282347E+38 : f32
    %68 = vector.shape_cast %7 : vector<1x7xi1> to vector<1x7xi1>
    %69 = vector.broadcast %68 : vector<1x7xi1> to vector<7x7xi1>
    %70 = vector.broadcast %cst_27 : f32 to vector<7x7xf32>
    %71 = arith.select %69, %67, %70 : vector<7x7xi1>, vector<7x7xf32>
    %cst_28 = arith.constant dense<0xFF800000> : vector<7xf32>
    %72 = vector.multi_reduction <maximumf>, %71, %cst_28 [1] : vector<7x7xf32> to vector<7xf32>
    %73 = vector.shape_cast %72 : vector<7xf32> to vector<7x1xf32>
    %74 = vector.broadcast %73 : vector<7x1xf32> to vector<7x7xf32>
    %75 = arith.subf %71, %74 : vector<7x7xf32>
    %76 = math.exp %75 : vector<7x7xf32>
    %cst_29 = arith.constant dense<0.000000e+00> : vector<7xf32>
    %77 = vector.multi_reduction <add>, %76, %cst_29 [1] : vector<7x7xf32> to vector<7xf32>
    %78 = vector.shape_cast %77 : vector<7xf32> to vector<7x1xf32>
    %79 = tpu.reciprocal %78 {approx = true} : vector<7x1xf32> -> vector<7x1xf32>
    %80 = vector.broadcast %79 : vector<7x1xf32> to vector<7x7xf32>
    %81 = arith.mulf %76, %80 : vector<7x7xf32>
    %cst_30 = arith.constant 0.000000e+00 : f32
    %82 = vector.shape_cast %7 : vector<1x7xi1> to vector<1x7xi1>
    %83 = vector.broadcast %82 : vector<1x7xi1> to vector<7x7xi1>
    %84 = vector.broadcast %cst_30 : f32 to vector<7x7xf32>
    %85 = arith.select %83, %81, %84 : vector<7x7xi1>, vector<7x7xf32>
    %86 = arith.truncf %85 : vector<7x7xf32> to vector<7x7xbf16>
    %cst_31 = arith.constant dense<0.000000e+00> : vector<7x8xf32>
    %87 = tpu.matmul %86, %64, %cst_31 {dimension_numbers = #tpu.dot_dimension_numbers<[1], [0], [0], [1], [0, 0, 1, 1], [], []>} : vector<7x7xbf16>, vector<7x8xbf16>, vector<7x8xf32> -> vector<7x8xf32>
    %c0_32 = arith.constant 0 : index
    %c16 = arith.constant 16 : index
    %88 = vector.load %arg9[%c0_32, %c16] : memref<7x32xf32, #tpu.memory_space<vmem>>, vector<7x8xf32>
    tpu.vector_store %arg9[%c0_32, %c16], %87 {strides = array<i32>} : memref<7x32xf32, #tpu.memory_space<vmem>>, vector<7x8xf32>,
    %89 = vector.extract_strided_slice %1 {offsets = [0, 24], sizes = [7, 8], strides = [1, 1]} : vector<7x32xbf16> to vector<7x8xbf16>
    %90 = vector.extract_strided_slice %3 {offsets = [0, 24], sizes = [7, 8], strides = [1, 1]} : vector<7x64xbf16> to vector<7x8xbf16>
    %91 = vector.extract_strided_slice %3 {offsets = [0, 56], sizes = [7, 8], strides = [1, 1]} : vector<7x64xbf16> to vector<7x8xbf16>
    %cst_33 = arith.constant dense<0.000000e+00> : vector<7x7xf32>
    %92 = tpu.matmul %89, %90, %cst_33 {dimension_numbers = #tpu.dot_dimension_numbers<[1], [1], [0], [0], [0, 0, 1, 0], [], []>} : vector<7x8xbf16>, vector<7x8xbf16>, vector<7x7xf32> -> vector<7x7xf32>
    %cst_34 = arith.constant 0.353553385 : f32
    %93 = vector.broadcast %cst_34 : f32 to vector<7x7xf32>
    %94 = arith.mulf %92, %93 : vector<7x7xf32>
    %cst_35 = arith.constant -3.40282347E+38 : f32
    %95 = vector.shape_cast %7 : vector<1x7xi1> to vector<1x7xi1>
    %96 = vector.broadcast %95 : vector<1x7xi1> to vector<7x7xi1>
    %97 = vector.broadcast %cst_35 : f32 to vector<7x7xf32>
    %98 = arith.select %96, %94, %97 : vector<7x7xi1>, vector<7x7xf32>
    %cst_36 = arith.constant dense<0xFF800000> : vector<7xf32>
    %99 = vector.multi_reduction <maximumf>, %98, %cst_36 [1] : vector<7x7xf32> to vector<7xf32>
    %100 = vector.shape_cast %99 : vector<7xf32> to vector<7x1xf32>
    %101 = vector.broadcast %100 : vector<7x1xf32> to vector<7x7xf32>
    %102 = arith.subf %98, %101 : vector<7x7xf32>
    %103 = math.exp %102 : vector<7x7xf32>
    %cst_37 = arith.constant dense<0.000000e+00> : vector<7xf32>
    %104 = vector.multi_reduction <add>, %103, %cst_37 [1] : vector<7x7xf32> to vector<7xf32>
    %105 = vector.shape_cast %104 : vector<7xf32> to vector<7x1xf32>
    %106 = tpu.reciprocal %105 {approx = true} : vector<7x1xf32> -> vector<7x1xf32>
    %107 = vector.broadcast %106 : vector<7x1xf32> to vector<7x7xf32>
    %108 = arith.mulf %103, %107 : vector<7x7xf32>
    %cst_38 = arith.constant 0.000000e+00 : f32
    %109 = vector.shape_cast %7 : vector<1x7xi1> to vector<1x7xi1>
    %110 = vector.broadcast %109 : vector<1x7xi1> to vector<7x7xi1>
    %111 = vector.broadcast %cst_38 : f32 to vector<7x7xf32>
    %112 = arith.select %110, %108, %111 : vector<7x7xi1>, vector<7x7xf32>
    %113 = arith.truncf %112 : vector<7x7xf32> to vector<7x7xbf16>
    %cst_39 = arith.constant dense<0.000000e+00> : vector<7x8xf32>
    %114 = tpu.matmul %113, %91, %cst_39 {dimension_numbers = #tpu.dot_dimension_numbers<[1], [0], [0], [1], [0, 0, 1, 1], [], []>} : vector<7x7xbf16>, vector<7x8xbf16>, vector<7x8xf32> -> vector<7x8xf32>
    %c0_40 = arith.constant 0 : index
    %c24 = arith.constant 24 : index
    %115 = vector.load %arg9[%c0_40, %c24] : memref<7x32xf32, #tpu.memory_space<vmem>>, vector<7x8xf32>
    tpu.vector_store %arg9[%c0_40, %c24], %114 {strides = array<i32>} : memref<7x32xf32, #tpu.memory_space<vmem>>, vector<7x8xf32>,
    %c0_41 = arith.constant 0 : index
    %c0_42 = arith.constant 0 : index
    %116 = vector.load %arg9[%c0_41, %c0_42] : memref<7x32xf32, #tpu.memory_space<vmem>>, vector<7x32xf32>
    %117 = arith.truncf %116 : vector<7x32xf32> to vector<7x32xbf16>
    %c0_43 = arith.constant 0 : index
    %c0_44 = arith.constant 0 : index
    %118 = vector.load %arg6[%c0_43, %c0_44] : memref<32x32xbf16, #tpu.memory_space<vmem>>, vector<32x32xbf16>
    %cst_45 = arith.constant dense<0.000000e+00> : vector<7x32xf32>
    %119 = tpu.matmul %117, %118, %cst_45 {dimension_numbers = #tpu.dot_dimension_numbers<[1], [0], [0], [1], [0, 0, 1, 1], [], []>} : vector<7x32xbf16>, vector<32x32xbf16>, vector<7x32xf32> -> vector<7x32xf32>
    %c0_46 = arith.constant 0 : index
    %c0_47 = arith.constant 0 : index
    %c0_48 = arith.constant 0 : index
    %120 = vector.load %arg5[%c0_46, %c0_47, %c0_48] : memref<1x7x32xf32, #tpu.memory_space<vmem>>, vector<1x7x32xf32>
    %121 = vector.shape_cast %120 : vector<1x7x32xf32> to vector<7x32xf32>
    %122 = arith.addf %121, %119 : vector<7x32xf32>
    %c0_49 = arith.constant 0 : index
    %c0_50 = arith.constant 0 : index
    %123 = vector.load %arg7[%c0_49, %c0_50] : memref<1x32xf32, #tpu.memory_space<vmem>>, vector<1x32xf32>
    %124 = vector.broadcast %123 : vector<1x32xf32> to vector<7x32xf32>
    %125 = arith.addf %122, %124 : vector<7x32xf32>
    %c0_51 = arith.constant 0 : index
    %c0_52 = arith.constant 0 : index
    %c0_53 = arith.constant 0 : index
    %126 = vector.load %arg8[%c0_51, %c0_52, %c0_53] : memref<1x7x32xf32, #tpu.memory_space<vmem>>, vector<1x7x32xf32>
    %127 = vector.shape_cast %126 : vector<1x7x32xf32> to vector<7x32xf32>
    %128 = vector.shape_cast %125 : vector<7x32xf32> to vector<1x7x32xf32>
    tpu.vector_store %arg8[%c0_51, %c0_52, %c0_53], %128 {strides = array<i32>} : memref<1x7x32xf32, #tpu.memory_space<vmem>>, vector<1x7x32xf32>,
    return
  }
  func.func @transform_0(%arg0: i32, %arg1: i32) -> (i32, i32, i32) {
    %c0_i32 = arith.constant 0 : i32
    %c0_i32_0 = arith.constant 0 : i32
    return %arg0, %arg1, %c0_i32 : i32, i32, i32
  }
  func.func @transform_1(%arg0: i32, %arg1: i32) -> (i32, i32, i32) {
    %c0_i32 = arith.constant 0 : i32
    %c0_i32_0 = arith.constant 0 : i32
    %c0_i32_1 = arith.constant 0 : i32
    return %arg0, %c0_i32, %c0_i32_0 : i32, i32, i32
  }
  func.func @transform_2(%arg0: i32, %arg1: i32) -> (i32, i32, i32) {
    %c0_i32 = arith.constant 0 : i32
    %c0_i32_0 = arith.constant 0 : i32
    %c0_i32_1 = arith.constant 0 : i32
    return %arg0, %c0_i32, %c0_i32_0 : i32, i32, i32
  }
  func.func @transform_3(%arg0: i32, %arg1: i32) -> (i32, i32, i32) {
    %c0_i32 = arith.constant 0 : i32
    %c0_i32_0 = arith.constant 0 : i32
    return %arg0, %arg1, %c0_i32 : i32, i32, i32
  }
  func.func @transform_4(%arg0: i32, %arg1: i32) -> (i32, i32) {
    %c0_i32 = arith.constant 0 : i32
    %c0_i32_0 = arith.constant 0 : i32
    %c0_i32_1 = arith.constant 0 : i32
    return %c0_i32, %c0_i32_0 : i32, i32
  }
  func.func @transform_5(%arg0: i32, %arg1: i32) -> (i32, i32) {
    %c0_i32 = arith.constant 0 : i32
    %c0_i32_0 = arith.constant 0 : i32
    %c0_i32_1 = arith.constant 0 : i32
    return %c0_i32, %c0_i32_0 : i32, i32
  }
  func.func @transform_6(%arg0: i32, %arg1: i32) -> (i32, i32, i32) {
    %c0_i32 = arith.constant 0 : i32
    %c0_i32_0 = arith.constant 0 : i32
    return %arg0, %arg1, %c0_i32 : i32, i32, i32
  }
}

module attributes {stable_mosaic.version = 11 : i64} {
  func.func @_layernorm_kernel(%arg0: i32, %arg1: memref<14x32xf32, #tpu.memory_space<vmem>>, %arg2: memref<1x32xf32, #tpu.memory_space<vmem>>, %arg3: memref<1x32xf32, #tpu.memory_space<vmem>>, %arg4: memref<14x32xf32, #tpu.memory_space<vmem>>) attributes {dimension_semantics = [#tpu.dimension_semantics<parallel>], iteration_bounds = array<i64: 1>, scalar_prefetch = 0 : i64, scratch_operands = 0 : i64, tpu.core_type = #tpu.core_type<tc>, window_params = [{transform_indices = @transform_0, window_bounds = array<i64: 14, 32>}, {pipeline_mode = #tpu.pipeline_mode<synchronous>, transform_indices = @transform_1, window_bounds = array<i64: 1, 32>}, {pipeline_mode = #tpu.pipeline_mode<synchronous>, transform_indices = @transform_2, window_bounds = array<i64: 1, 32>}, {transform_indices = @transform_3, window_bounds = array<i64: 14, 32>}]} {
    %c0 = arith.constant 0 : index
    %c0_0 = arith.constant 0 : index
    %0 = vector.load %arg1[%c0, %c0_0] : memref<14x32xf32, #tpu.memory_space<vmem>>, vector<14x32xf32>
    %cst = arith.constant dense<0.000000e+00> : vector<14xf32>
    %1 = vector.multi_reduction <add>, %0, %cst [1] : vector<14x32xf32> to vector<14xf32>
    %2 = vector.shape_cast %1 : vector<14xf32> to vector<14x1xf32>
    %cst_1 = arith.constant 3.200000e+01 : f32
    %3 = vector.broadcast %cst_1 : f32 to vector<14x1xf32>
    %4 = arith.divf %2, %3 : vector<14x1xf32>
    %5 = vector.broadcast %4 : vector<14x1xf32> to vector<14x32xf32>
    %6 = arith.subf %0, %5 : vector<14x32xf32>
    %7 = arith.mulf %6, %6 : vector<14x32xf32>
    %cst_2 = arith.constant dense<0.000000e+00> : vector<14xf32>
    %8 = vector.multi_reduction <add>, %7, %cst_2 [1] : vector<14x32xf32> to vector<14xf32>
    %9 = vector.shape_cast %8 : vector<14xf32> to vector<14x1xf32>
    %cst_3 = arith.constant 3.200000e+01 : f32
    %10 = vector.broadcast %cst_3 : f32 to vector<14x1xf32>
    %11 = arith.divf %9, %10 : vector<14x1xf32>
    %cst_4 = arith.constant 9.99999996E-13 : f32
    %12 = vector.broadcast %cst_4 : f32 to vector<14x1xf32>
    %13 = arith.addf %11, %12 : vector<14x1xf32>
    %14 = math.rsqrt %13 : vector<14x1xf32>
    %15 = vector.broadcast %14 : vector<14x1xf32> to vector<14x32xf32>
    %16 = arith.mulf %6, %15 : vector<14x32xf32>
    %c0_5 = arith.constant 0 : index
    %c0_6 = arith.constant 0 : index
    %17 = vector.load %arg2[%c0_5, %c0_6] : memref<1x32xf32, #tpu.memory_space<vmem>>, vector<1x32xf32>
    %18 = vector.broadcast %17 : vector<1x32xf32> to vector<14x32xf32>
    %19 = arith.mulf %16, %18 : vector<14x32xf32>
    %c0_7 = arith.constant 0 : index
    %c0_8 = arith.constant 0 : index
    %20 = vector.load %arg3[%c0_7, %c0_8] : memref<1x32xf32, #tpu.memory_space<vmem>>, vector<1x32xf32>
    %21 = vector.broadcast %20 : vector<1x32xf32> to vector<14x32xf32>
    %22 = arith.addf %19, %21 : vector<14x32xf32>
    %c0_9 = arith.constant 0 : index
    %c0_10 = arith.constant 0 : index
    %23 = vector.load %arg4[%c0_9, %c0_10] : memref<14x32xf32, #tpu.memory_space<vmem>>, vector<14x32xf32>
    tpu.vector_store %arg4[%c0_9, %c0_10], %22 {strides = array<i32>} : memref<14x32xf32, #tpu.memory_space<vmem>>, vector<14x32xf32>,
    return
  }
  func.func @transform_0(%arg0: i32) -> (i32, i32) {
    %c0_i32 = arith.constant 0 : i32
    %c0_i32_0 = arith.constant 0 : i32
    return %arg0, %c0_i32 : i32, i32
  }
  func.func @transform_1(%arg0: i32) -> (i32, i32) {
    %c0_i32 = arith.constant 0 : i32
    %c0_i32_0 = arith.constant 0 : i32
    %c0_i32_1 = arith.constant 0 : i32
    return %c0_i32, %c0_i32_0 : i32, i32
  }
  func.func @transform_2(%arg0: i32) -> (i32, i32) {
    %c0_i32 = arith.constant 0 : i32
    %c0_i32_0 = arith.constant 0 : i32
    %c0_i32_1 = arith.constant 0 : i32
    return %c0_i32, %c0_i32_0 : i32, i32
  }
  func.func @transform_3(%arg0: i32) -> (i32, i32) {
    %c0_i32 = arith.constant 0 : i32
    %c0_i32_0 = arith.constant 0 : i32
    return %arg0, %c0_i32 : i32, i32
  }
}

</mosaic_0001>

<bundles_post_ra>
// kernel: tpu_custom_call.1
= control target key start
LH: loop header
LB: loop body
LE: loop exit
PB: predicated region body
PF: predicated region fallthrough
CT: control target
= control target key end

     0   :  { %7 = vsyncpa [#allocation3], 0  ;;  %s649_s0 = inlined_call_operand.hbm [shape: f32[16,128], index: 0, kind: input, shape index: {}]   ;;  %s650_s1 = inlined_call_operand.hbm [shape: f32[8,128], index: 1, kind: input, shape index: {}]   ;;  %s651_s2 = inlined_call_operand.hbm [shape: f32[16,128], index: 2, kind: output, shape index: {}]  }
   0x1   :  { %9 = vsyncpa [#allocation3 + $0x1], 0 }
   0x2   :  { %10 = vsyncpa [#allocation6], 0 }
   0x3   :  { %11 = vsyncpa [#allocation4], 0 }
   0x4   :  { %13 = vsyncpa [#allocation4 + $0x1], 0  ;;  %s483_s9 = smov 0   ;;  %s485_s10 = smov 0  }
   0x5   :  { %s487_s11 = smov 0   ;;  %s489_s12 = smov 0  }
   0x6 LB: > { %s504_s13 = sadd.s32 4294967295, %s463_s12   ;;  %s270_s14 = sadd.s32 4294967294, %s463_s12   ;;  %s463_s12 = sphi %s489_s12, %s674_s12   ;;  %s459_s11 = sphi %s487_s11, %s673_s11   ;;  %s455_s10 = sphi %s485_s10, %s672_s10   ;;  %s451_s9 = sphi %s483_s9, %s671_s9  }
   0x7   : > { %p39_p0 = scmp.ne.s32.totalorder %s455_s10, %s451_s9  ;;  %p652_p1 = scmp.eq.s32.totalorder %s504_s13, 0 }
   0x8   : > { %p90_p3 = scmp.eq.s32.totalorder %s270_s14, 1  ;;  %p271_p5 = scmp.ge.s32.totalorder %s463_s12, 1 }
   0x9   : > { %p513_p4 = por %p652_p1, %p39_p0  ;;  %p97_p7 = scmp.lt.s32.totalorder %s463_s12, 3 }
   0xa   : > { %p518_p6 = por %p90_p3, %p39_p0  ;;  %s465_s18 = smov [#allocation5]  }
   0xb   : > { %s656_s15 = scalar_select %p513_p4, 1, 0 }
   0xc   : > { %s657_s16 = scalar_select %p518_p6, 1, 0 }
   0xd   : > { %p523_p8 = pnand %p271_p5, %p97_p7  ;;  %s110_s19 = sshll.u32 %s465_s18, 4  ;;  %s111_s19 = int_to_ptr.vmem [resolvable:$true] %s110_s19 }
   0xe   : > { %s531_s20 = sadd.s32 1, %s463_s12   ;;  %s26_s24 = sadd.s32 1, %s459_s11 }
   0xf   : > { %s658_s17 = scalar_select %p523_p8, 1, 0 }
  0x10   : > { %p292_p10 = pneg %p523_p8  ;;  %s23_s22 = ssub.s32 %s463_s12, %s531_s20 }
  0x11   : > { %p541_p12 = scmp.eq.s32.totalorder %s23_s22, 0  ;;  %p33_p13 = scmp.ne.s32.totalorder %s459_s11, %s455_s10 }
  0x12   : > { %p535_p11 = pnand %p292_p10, %p652_p1  ;;  %s352_s25 = scalar_lea.vmem %s111_s19, 128 }
  0x13   : > { %p353_p3 = scmp.ne.s32.totalorder %s111_s19, %s352_s25  ;;  %p360_p9 = scmp.lt.s32.totalorder %s111_s19, %s111_s19 }
  0x14   : > { %p343_p0 = pneg %p535_p11  ;;  %p361_p2 = scmp.lt.s32.totalorder %s352_s25, %s352_s25 }
  0x16   : > { %p355_p5 = pnand %p353_p3, %p343_p0  ;;  %p362_p10 = por %p361_p2, %p360_p9 }
  0x18   : > { %p356_p7 = pneg %p355_p5 }
  0x1a   : > { %p363_p1 = pnand %p362_p10, %p356_p7 }
  0x1c   : > { %366 = shalt.err (!%p363_p1)
}
  0x1d   : > { %295 = dma.hbm_to_vmem [thread:$0]  (!%p535_p11), %s650_s1, 128, %s111_s19, [#allocation6]  }
  0x1e   : > { %s558_s28 = scalar_select %p541_p12, %s459_s11, %s26_s24  }
  0x1f   : > { %p34_p1 = scmp.eq.s32.totalorder %s463_s12, 0  ;;  %p661_p2 = scmp.eq.s32.totalorder %s504_s13, 1 }
  0x20   : > { %p305_p0 = scmp.lt.s32.totalorder %s463_s12, 2  ;;  %s121_s30 = sand.u32 1, %s459_s11  }
  0x21   : > { %p566_p9 = por %p661_p2, %p33_p13  ;;  %p35_p3 = por %p34_p1, %p33_p13 }
  0x22   : > { %s274_s3 = sshll.u32 %s121_s30, 3  ;;  %s275_s4 = sshll.u32 %s463_s12, 7 }
  0x23   : > { %s662_s29 = scalar_select %p566_p9, 1, 0 }
  0x24   : > { %s579_s7 = scalar_lea.hbm %s649_s0, %s275_s4  ;;  %s125_s8 = scalar_lea.vmem [#allocation2], %s274_s3 }
  0x25   : > { %s132_s14 = sshll.u32 %s125_s8, 4  ;;  %p581_p11 = pnand %p305_p0, %p35_p3  ;;  %s133_s14 = int_to_ptr.vmem [resolvable:$true] %s132_s14 }
  0x26   : > { %s122_s19 = scalar_lea.sflag [#allocation3], %s121_s30  ;;  %s367_s21 = scalar_lea.hbm %s579_s7, 128 }
  0x27   : > { %p368_p12 = scmp.ne.s32.totalorder %s579_s7, %s367_s21  ;;  %p369_p13 = pneg %p581_p11 }
  0x28   : > { %s372_s24 = scalar_lea.hbm %s649_s0, 256  ;;  %p373_p10 = scmp.lt.s32.totalorder %s579_s7, %s649_s0 }
  0x29   : > { %p370_p5 = pnand %p369_p13, %p368_p12  ;;  %p374_p1 = scmp.lt.s32.totalorder %s372_s24, %s367_s21 }
  0x2b   : > { %p371_p7 = pneg %p370_p5  ;;  %p375_p2 = por %p374_p1, %p373_p10 }
  0x2d   : > { %p376_p0 = pnand %p375_p2, %p371_p7 }
  0x2f   : > { %379 = shalt.err (!%p376_p0)
}
  0x30   : > { %s380_s27 = scalar_lea.vmem %s133_s14, 128  ;;  %s466_s30 = smov [#allocation2]  }
  0x31   : > { %p381_p3 = scmp.ne.s32.totalorder %s133_s14, %s380_s27  ;;  %s385_s3 = sshll.u32 %s466_s30, 4  ;;  %s386_s3 = int_to_ptr.vmem [resolvable:$false] %s385_s3 }
  0x32   : > { %s387_s4 = scalar_lea.vmem %s386_s3, 256  ;;  %p388_p12 = scmp.lt.s32.totalorder %s133_s14, %s386_s3 }
  0x33   : > { %p383_p6 = pnand %p381_p3, %p369_p13  ;;  %p389_p5 = scmp.lt.s32.totalorder %s387_s4, %s380_s27 }
  0x35   : > { %p384_p9 = pneg %p383_p6  ;;  %p390_p4 = por %p389_p5, %p388_p12 }
  0x37   : > { %p391_p8 = pnand %p390_p4, %p384_p9 }
  0x39   : > { %394 = shalt.err (!%p391_p8)
}
  0x3a   : > { %299 = dma.hbm_to_vmem [thread:$0]  (!%p581_p11), %s579_s7, 128, %s133_s14, %s122_s19  }
  0x3b   : > { %p664_p7 = scmp.ne.s32.totalorder %s658_s17, 0 }
  0x3c   : > { %s602_s5 = sand.u32 (!%p664_p7), 1, %s455_s10   ;;  %p665_p6 = scmp.ne.s32.totalorder (!%p664_p7), %s656_s15, 0 }
  0x3d   : > { %141 = sbr.rel (%p664_p7) target bundleno = 95 (0x5f), region = 28  ;;  %s277_s6 = sshll.u32 (!%p664_p7), %s602_s5, 3 }
  0x3e   : > { %s144_s8 = scalar_lea.sflag (!%p664_p7), [#allocation3], %s602_s5  ;;  %s147_s21 = scalar_lea.vmem (!%p664_p7), [#allocation2], %s277_s6 }
  0x42   : > { %438 = dma.done.wait (%p665_p6), %s144_s8, 128  }
  0x43   : > { %440 = vsyncadd (%p665_p6), %s144_s8, 4294967168  ;;  %p666_p4 = scmp.eq.s32.totalorder %s504_s13, 0 }
  0x45   : > { %442 = dma.done.wait (%p666_p4), [#allocation6], 128   ;;  %p667_p8 = pmov %p666_p4 }
  0x46   : > { %s171_s17 = scalar_lea.vmem [#allocation7], %s277_s6  ;;  %s281_s14 = sshll.u32 %s504_s13, 7  ;;  %v172_v0 = vld [vmem:[%s147_s21] sm:$0xff]  ;;  %v173_v1 = vld [vmem:[#allocation5] sm:$0xff] }
  0x47   : > { %444 = vsyncadd (%p667_p8), [#allocation6], 4294967168  ;;  %s190_s7 = sshll.u32 %s171_s17, 4  ;;  %v174_v2 = vadd.f32 %v173_v1, %v172_v0  ;;  %s188_s15 = scalar_lea.hbm %s651_s2, %s281_s14  ;;  %s191_s7 = int_to_ptr.vmem [resolvable:$true] %s190_s7 }
  0x48   : > { %s177_s22 = scalar_lea.sflag [#allocation4], %s602_s5  ;;  %s395_s23 = scalar_lea.vmem %s191_s7, 128 }
  0x49   : > { %175 = vst [vmem:[%s171_s17] sm:$0xff] %v174_v2  ;;  %p396_p9 = scmp.ne.s32.totalorder %s191_s7, %s395_s23  ;;  %p668_p11 = scmp.ne.s32.totalorder %s662_s29, 0 }
  0x4a   : > { %s467_s24 = smov [#allocation7]  }
  0x4b   : > { %p397_p13 = pnand %p396_p9, %p668_p11  ;;  %s399_s25 = sshll.u32 %s467_s24, 4  ;;  %s400_s25 = int_to_ptr.vmem [resolvable:$false] %s399_s25 }
  0x4c   : > { %s401_s26 = scalar_lea.vmem %s400_s25, 256  ;;  %p402_p1 = scmp.lt.s32.totalorder %s191_s7, %s400_s25 }
  0x4d   : > { %p398_p10 = pneg %p397_p13  ;;  %p403_p2 = scmp.lt.s32.totalorder %s401_s26, %s395_s23 }
  0x4f   : > { %p404_p0 = por %p403_p2, %p402_p1 }
  0x51   : > { %p405_p3 = pnand %p404_p0, %p398_p10 }
  0x53   : > { %408 = shalt.err (!%p405_p3)
}
  0x54   : > { %s409_s13 = scalar_lea.hbm %s188_s15, 128  ;;  %s413_s3 = scalar_lea.hbm %s651_s2, 256 }
  0x55   : > { %p410_p12 = scmp.ne.s32.totalorder %s188_s15, %s409_s13  ;;  %p414_p6 = scmp.lt.s32.totalorder %s188_s15, %s651_s2 }
  0x56   : > { %p415_p4 = scmp.lt.s32.totalorder %s413_s3, %s409_s13 }
  0x57   : > { %p411_p5 = pnand %p410_p12, %p668_p11 }
  0x58   : > { %p416_p8 = por %p415_p4, %p414_p6 }
  0x59   : > { %p412_p7 = pneg %p411_p5 }
  0x5b   : > { %p417_p9 = pnand %p416_p8, %p412_p7 }
  0x5d   : > { %420 = shalt.err (!%p417_p9)
}
  0x5e   : > { %290 = dma.vmem_to_hbm [thread:$0]  (%p668_p11), %s191_s7, 128, %s188_s15, %s177_s22  }
  0x5f PF: > { %s202_s6 = sand.u32 1, %s451_s9   ;;  %p669_p13 = scmp.ne.s32.totalorder %s657_s16, 0 }
  0x60   : > { %p670_p10 = scmp.ge.s32.totalorder %s463_s12, 2  ;;  %s203_s8 = scalar_lea.sflag [#allocation4], %s202_s6 }
  0x62   : > { %p301_p1 = pnand %p670_p10, %p669_p13 }
  0x64   : > { %p302_p2 = pneg %p301_p1 }
  0x66   : > { %446 = dma.done.wait (%p302_p2), %s203_s8, 128  }
  0x67   : > { %448 = vsyncadd (%p302_p2), %s203_s8, 4294967168  ;;  %p16_p0 = scmp.ge.s32.totalorder %s531_s20, 4   ;;  %s671_s9 = smov %s455_s10 }
  0x68   : > { %s672_s10 = smov %s459_s11  ;;  %s673_s11 = smov %s558_s28 }
  0x69   : > { %s674_s12 = smov %s531_s20  ;;  %18 = sbr.rel (!%p16_p0) target bundleno = 6 (0x6), region = 77 }
  0x6e   :  { %208 = vsyncpa [#allocation3], 1 }
  0x6f   :  { %210 = vsyncpa [#allocation3 + $0x1], 1 }
  0x70   :  { %211 = vsyncpa [#allocation6], 1 }
  0x71   :  { %212 = vsyncpa [#allocation4], 1 }
  0x72   :  { %214 = vsyncpa [#allocation4 + $0x1], 1 }

// kernel: encoder_forward.10
= control target key start
LH: loop header
LB: loop body
LE: loop exit
PB: predicated region body
PF: predicated region fallthrough
CT: control target
= control target key end

     0   :  { %vm114_vm0 = vcmask 1043456   ;;  %vm115_vm1 = vcmask 1044480   ;;  %v392_v1 = vmov 65535   ;;  %vm71_vm2 = vcmask 72704   ;;  %s659_s1 = inlined_call_operand.vmem [shape: bf16[9,32], index: 1, kind: input, shape index: {}]   ;;  %s660_s0 = inlined_call_operand.vmem [shape: f32[224,9], index: 0, kind: input, shape index: {}]   ;;  %s661_s2 = inlined_call_operand.vmem [shape: f32[1,32], index: 2, kind: input, shape index: {}]   ;;  %s662_s3 = inlined_call_operand.vmem [shape: f32[224,32], index: 3, kind: output, shape index: {}]  }
   0x1   :  { %v391_v0 = vld [vmem:[%s659_s1] sm:$0x1f]   ;;  %v116_v2 = vsel %vm114_vm0, 4294967295, %v392_v1  ;;  %v16_v4 = vld [vmem:[%s660_s0 + $0x8] sm:$0xff]  ;;  %v17_v5 = vld [vmem:[%s660_s0 + $0x10] sm:$0xff]  ;;  %vm294_vm3 = vcmask 261120  }
   0x2   :  { %v15_v3 = vld [vmem:[%s660_s0] sm:$0xff]  ;;  %v117_v6 = vsel %vm115_vm1, %v116_v2, 0  ;;  %v18_v8 = vld [vmem:[%s660_s0 + $0x18] sm:$0xff]  ;;  %v32_v10 = vld [vmem:[%s660_s0 + $0x88] sm:$0xff] }
   0x3   :  { %v43_v7 = vpack.c.bf16 %v16_v4, %v15_v3  ;;  %v31_v9 = vld [vmem:[%s660_s0 + $0x80] sm:$0xff]  ;;  %v119_v11 = vand.u32 %v391_v0, %v117_v6  ;;  %v33_v13 = vld [vmem:[%s660_s0 + $0x90] sm:$0xff]  ;;  %v34_v14 = vld [vmem:[%s660_s0 + $0x98] sm:$0xff]  ;;  %v44_v17 = vpack.c.bf16 %v18_v8, %v17_v5 }
   0x4   :  { %v51_v12 = vpack.c.bf16 %v32_v10, %v31_v9  ;;  %v19_v15 = vld [vmem:[%s660_s0 + $0x20] sm:$0xff]  ;;  %v20_v16 = vld [vmem:[%s660_s0 + $0x28] sm:$0xff]  ;;  %v52_v18 = vpack.c.bf16 %v34_v14, %v33_v13  ;;  %v21_v23 = vld [vmem:[%s660_s0 + $0x30] sm:$0xff] }
   0x5   :  { %360 = vmatprep.mubr.msk.bf16.mxu0 %vm71_vm2, %v43_v7  ;;  %358 = vmatprep.subr.bf16.mxu0 %v119_v11  ;;  %v35_v19 = vld [vmem:[%s660_s0 + $0xa0] sm:$0xff]  ;;  %v36_v20 = vld [vmem:[%s660_s0 + $0xa8] sm:$0xff]  ;;  %v45_v21 = vpack.c.bf16 %v20_v16, %v19_v15  ;;  %v22_v24 = vld [vmem:[%s660_s0 + $0x38] sm:$0xff] }
   0x6   :  { %388 = vmatprep.subr.bf16.mxu1 %v119_v11  ;;  %359 = vmatpush3.bf16.msra.mxu0 %v119_v11  ;;  %v53_v22 = vpack.c.bf16 %v36_v20, %v35_v19  ;;  %v37_v25 = vld [vmem:[%s660_s0 + $0xb0] sm:$0xff]  ;;  %v38_v26 = vld [vmem:[%s660_s0 + $0xb8] sm:$0xff]  ;;  %v23_v27 = vld [vmem:[%s660_s0 + $0x40] sm:$0xff]  ;;  %v46_v31 = vpack.c.bf16 %v22_v24, %v21_v23 }
   0x7   :  { %389 = vmatpush3.bf16.msra.mxu1 %v119_v11  ;;  %376 = vmatprep.mubr.msk.bf16.mxu1 %vm71_vm2, %v51_v12  ;;  %v24_v28 = vld [vmem:[%s660_s0 + $0x48] sm:$0xff]  ;;  %v39_v29 = vld [vmem:[%s660_s0 + $0xc0] sm:$0xff]  ;;  %v54_v32 = vpack.c.bf16 %v38_v26, %v37_v25  ;;  %v25_v35 = vld [vmem:[%s660_s0 + $0x50] sm:$0xff] }
   0x8   :  { %v40_v30 = vld [vmem:[%s660_s0 + $0xc8] sm:$0xff]  ;;  %v47_v33 = vpack.c.bf16 %v24_v28, %v23_v27  ;;  %v26_v36 = vld [vmem:[%s660_s0 + $0x58] sm:$0xff]  ;;  %v41_v37 = vld [vmem:[%s660_s0 + $0xd0] sm:$0xff] }
   0x9   :  { %361 = vmatmul.mubr.msk.bf16.vlgmr.msra.gmra.mxu0 %vm71_vm2, %v44_v17  ;;  %v55_v34 = vpack.c.bf16 %v40_v30, %v39_v29  ;;  %v42_v38 = vld [vmem:[%s660_s0 + $0xd8] sm:$0xff]  ;;  %v27_v39 = vld [vmem:[%s660_s0 + $0x60] sm:$0xff]  ;;  %v28_v40 = vld [vmem:[%s660_s0 + $0x68] sm:$0xff]  ;;  %v48_v41 = vpack.c.bf16 %v26_v36, %v25_v35 }
   0xa   :  { %377 = vmatmul.mubr.msk.bf16.vlgmr.msra.gmra.mxu1 %vm71_vm2, %v52_v18  ;;  %364 = vmatprep.mubr.msk.bf16.mxu0 %vm71_vm2, %v45_v21  ;;  %v56_v42 = vpack.c.bf16 %v42_v38, %v41_v37  ;;  %v49_v43 = vpack.c.bf16 %v28_v40, %v27_v39  ;;  %v29_v44 = vld [vmem:[%s660_s0 + $0x70] sm:$0xff]  ;;  %v30_v45 = vld [vmem:[%s660_s0 + $0x78] sm:$0xff]  ;;  %v517_v47 = vld [vmem:[%s661_s2] ss:$0 sm:$0xff] }
   0xb   :  { %380 = vmatprep.mubr.msk.bf16.mxu1 %vm71_vm2, %v53_v22  ;;  %v50_v46 = vpack.c.bf16 %v30_v45, %v29_v44 }
  0x11   :  { %365 = vmatmul.mubr.msk.bf16.gmra.mxu0 %vm71_vm2, %v46_v31 }
  0x12   :  { %381 = vmatmul.mubr.msk.bf16.gmra.mxu1 %vm71_vm2, %v54_v32  ;;  %368 = vmatprep.mubr.msk.bf16.mxu0 %vm71_vm2, %v47_v33 }
  0x13   :  { %384 = vmatprep.mubr.msk.bf16.mxu1 %vm71_vm2, %v55_v34 }
  0x19   :  { %369 = vmatmul.mubr.msk.bf16.gmra.mxu0 %vm71_vm2, %v48_v41 }
  0x1a   :  { %385 = vmatmul.mubr.msk.bf16.gmra.mxu1 %vm71_vm2, %v56_v42  ;;  %372 = vmatprep.mubr.msk.bf16.mxu0 %vm71_vm2, %v49_v43 }
  0x21   :  { %373 = vmatmul.mubr.msk.bf16.gmra.mxu0 %vm71_vm2, %v50_v46 }
  0xc9   :  { %v362_v48 = vpop.f32.mrf.mxu0 }
  0xca   :  { %v378_v49 = vpop.f32.mrf.mxu1  ;;  %v164_v50 = vadd.f32 %v362_v48, %v517_v47 }
  0xcb   :  { %v228_v51 = vadd.f32 %v378_v49, %v517_v47  ;;  %v155_v52 = vpop.f32.mrf.mxu0 }
  0xcc   :  { %v219_v53 = vpop.f32.mrf.mxu1  ;;  %v268_v54 = vmax.f32 %v164_v50, 0.0  ;;  %v156_v55 = vadd.f32 %v517_v47, %v155_v52 }
  0xcd   :  { %v284_v56 = vmax.f32 %v228_v51, 0.0  ;;  %v220_v57 = vadd.f32 %v517_v47, %v219_v53  ;;  %v363_v58 = vpop.f32.mrf.mxu0 }
  0xce   :  { %v379_v59 = vpop.f32.mrf.mxu1  ;;  %297 = vst.msk [vmem:[%s662_s3 + $0x10] sm:$0xff] %vm294_vm3, %v268_v54  ;;  %v266_v60 = vmax.f32 %v156_v55, 0.0  ;;  %v167_v61 = vadd.f32 %v363_v58, %v517_v47 }
  0xcf   :  { %313 = vst.msk [vmem:[%s662_s3 + $0x90] sm:$0xff] %vm294_vm3, %v284_v56  ;;  %v282_v62 = vmax.f32 %v220_v57, 0.0  ;;  %v231_v63 = vadd.f32 %v379_v59, %v517_v47  ;;  %v158_v0 = vpop.f32.mrf.mxu0 }
  0xd0   :  { %v222_v1 = vpop.f32.mrf.mxu1  ;;  %295 = vst.msk [vmem:[%s662_s3] sm:$0xff] %vm294_vm3, %v266_v60  ;;  %v269_v2 = vmax.f32 %v167_v61, 0.0  ;;  %v159_v3 = vadd.f32 %v517_v47, %v158_v0 }
  0xd1   :  { %311 = vst.msk [vmem:[%s662_s3 + $0x80] sm:$0xff] %vm294_vm3, %v282_v62  ;;  %v285_v4 = vmax.f32 %v231_v63, 0.0  ;;  %v223_v5 = vadd.f32 %v517_v47, %v222_v1  ;;  %v366_v6 = vpop.f32.mrf.mxu0 }
  0xd2   :  { %v382_v7 = vpop.f32.mrf.mxu1  ;;  %298 = vst.msk [vmem:[%s662_s3 + $0x18] sm:$0xff] %vm294_vm3, %v269_v2  ;;  %v267_v8 = vmax.f32 %v159_v3, 0.0  ;;  %v180_v9 = vadd.f32 %v366_v6, %v517_v47 }
  0xd3   :  { %314 = vst.msk [vmem:[%s662_s3 + $0x98] sm:$0xff] %vm294_vm3, %v285_v4  ;;  %v283_v10 = vmax.f32 %v223_v5, 0.0  ;;  %v244_v11 = vadd.f32 %v382_v7, %v517_v47  ;;  %v171_v12 = vpop.f32.mrf.mxu0 }
  0xd4   :  { %v235_v13 = vpop.f32.mrf.mxu1  ;;  %296 = vst.msk [vmem:[%s662_s3 + $0x8] sm:$0xff] %vm294_vm3, %v267_v8  ;;  %v272_v14 = vmax.f32 %v180_v9, 0.0  ;;  %v172_v15 = vadd.f32 %v517_v47, %v171_v12 }
  0xd5   :  { %312 = vst.msk [vmem:[%s662_s3 + $0x88] sm:$0xff] %vm294_vm3, %v283_v10  ;;  %v288_v16 = vmax.f32 %v244_v11, 0.0  ;;  %v236_v17 = vadd.f32 %v517_v47, %v235_v13  ;;  %v367_v18 = vpop.f32.mrf.mxu0 }
  0xd6   :  { %v383_v19 = vpop.f32.mrf.mxu1  ;;  %301 = vst.msk [vmem:[%s662_s3 + $0x30] sm:$0xff] %vm294_vm3, %v272_v14  ;;  %v270_v20 = vmax.f32 %v172_v15, 0.0  ;;  %v183_v21 = vadd.f32 %v367_v18, %v517_v47 }
  0xd7   :  { %317 = vst.msk [vmem:[%s662_s3 + $0xb0] sm:$0xff] %vm294_vm3, %v288_v16  ;;  %v286_v22 = vmax.f32 %v236_v17, 0.0  ;;  %v247_v23 = vadd.f32 %v383_v19, %v517_v47  ;;  %v174_v24 = vpop.f32.mrf.mxu0 }
  0xd8   :  { %v238_v25 = vpop.f32.mrf.mxu1  ;;  %299 = vst.msk [vmem:[%s662_s3 + $0x20] sm:$0xff] %vm294_vm3, %v270_v20  ;;  %v273_v26 = vmax.f32 %v183_v21, 0.0  ;;  %v175_v27 = vadd.f32 %v517_v47, %v174_v24 }
  0xd9   :  { %315 = vst.msk [vmem:[%s662_s3 + $0xa0] sm:$0xff] %vm294_vm3, %v286_v22  ;;  %v289_v28 = vmax.f32 %v247_v23, 0.0  ;;  %v239_v29 = vadd.f32 %v517_v47, %v238_v25  ;;  %v370_v30 = vpop.f32.mrf.mxu0 }
  0xda   :  { %v386_v31 = vpop.f32.mrf.mxu1  ;;  %302 = vst.msk [vmem:[%s662_s3 + $0x38] sm:$0xff] %vm294_vm3, %v273_v26  ;;  %v271_v32 = vmax.f32 %v175_v27, 0.0  ;;  %v196_v33 = vadd.f32 %v370_v30, %v517_v47 }
  0xdb   :  { %318 = vst.msk [vmem:[%s662_s3 + $0xb8] sm:$0xff] %vm294_vm3, %v289_v28  ;;  %v287_v34 = vmax.f32 %v239_v29, 0.0  ;;  %v260_v35 = vadd.f32 %v386_v31, %v517_v47  ;;  %v187_v36 = vpop.f32.mrf.mxu0 }
  0xdc   :  { %v251_v37 = vpop.f32.mrf.mxu1  ;;  %300 = vst.msk [vmem:[%s662_s3 + $0x28] sm:$0xff] %vm294_vm3, %v271_v32  ;;  %v276_v38 = vmax.f32 %v196_v33, 0.0  ;;  %v188_v39 = vadd.f32 %v517_v47, %v187_v36 }
  0xdd   :  { %316 = vst.msk [vmem:[%s662_s3 + $0xa8] sm:$0xff] %vm294_vm3, %v287_v34  ;;  %v292_v40 = vmax.f32 %v260_v35, 0.0  ;;  %v252_v41 = vadd.f32 %v517_v47, %v251_v37  ;;  %v371_v42 = vpop.f32.mrf.mxu0 }
  0xde   :  { %v387_v43 = vpop.f32.mrf.mxu1  ;;  %305 = vst.msk [vmem:[%s662_s3 + $0x50] sm:$0xff] %vm294_vm3, %v276_v38  ;;  %v274_v44 = vmax.f32 %v188_v39, 0.0  ;;  %v199_v45 = vadd.f32 %v371_v42, %v517_v47 }
  0xdf   :  { %321 = vst.msk [vmem:[%s662_s3 + $0xd0] sm:$0xff] %vm294_vm3, %v292_v40  ;;  %v290_v46 = vmax.f32 %v252_v41, 0.0  ;;  %v263_v48 = vadd.f32 %v387_v43, %v517_v47  ;;  %v190_v49 = vpop.f32.mrf.mxu0 }
  0xe0   :  { %v254_v50 = vpop.f32.mrf.mxu1  ;;  %303 = vst.msk [vmem:[%s662_s3 + $0x40] sm:$0xff] %vm294_vm3, %v274_v44  ;;  %v277_v51 = vmax.f32 %v199_v45, 0.0  ;;  %v191_v52 = vadd.f32 %v517_v47, %v190_v49 }
  0xe1   :  { %319 = vst.msk [vmem:[%s662_s3 + $0xc0] sm:$0xff] %vm294_vm3, %v290_v46  ;;  %v293_v53 = vmax.f32 %v263_v48, 0.0  ;;  %v255_v54 = vadd.f32 %v517_v47, %v254_v50  ;;  %v374_v55 = vpop.f32.mrf.mxu0 }
  0xe2   :  { %306 = vst.msk [vmem:[%s662_s3 + $0x58] sm:$0xff] %vm294_vm3, %v277_v51  ;;  %v275_v56 = vmax.f32 %v191_v52, 0.0  ;;  %v212_v57 = vadd.f32 %v374_v55, %v517_v47 }
  0xe3   :  { %322 = vst.msk [vmem:[%s662_s3 + $0xd8] sm:$0xff] %vm294_vm3, %v293_v53  ;;  %v291_v58 = vmax.f32 %v255_v54, 0.0  ;;  %v203_v59 = vpop.f32.mrf.mxu0 }
  0xe4   :  { %304 = vst.msk [vmem:[%s662_s3 + $0x48] sm:$0xff] %vm294_vm3, %v275_v56  ;;  %v280_v60 = vmax.f32 %v212_v57, 0.0  ;;  %v204_v61 = vadd.f32 %v517_v47, %v203_v59 }
  0xe5   :  { %320 = vst.msk [vmem:[%s662_s3 + $0xc8] sm:$0xff] %vm294_vm3, %v291_v58  ;;  %v375_v62 = vpop.f32.mrf.mxu0 }
  0xe6   :  { %309 = vst.msk [vmem:[%s662_s3 + $0x70] sm:$0xff] %vm294_vm3, %v280_v60  ;;  %v278_v63 = vmax.f32 %v204_v61, 0.0  ;;  %v215_v0 = vadd.f32 %v375_v62, %v517_v47 }
  0xe7   :  { %v206_v1 = vpop.f32.mrf.mxu0 }
  0xe8   :  { %307 = vst.msk [vmem:[%s662_s3 + $0x60] sm:$0xff] %vm294_vm3, %v278_v63  ;;  %v281_v2 = vmax.f32 %v215_v0, 0.0  ;;  %v207_v3 = vadd.f32 %v517_v47, %v206_v1 }
  0xea   :  { %310 = vst.msk [vmem:[%s662_s3 + $0x78] sm:$0xff] %vm294_vm3, %v281_v2  ;;  %v279_v4 = vmax.f32 %v207_v3, 0.0 }
  0xec   :  { %308 = vst.msk [vmem:[%s662_s3 + $0x68] sm:$0xff] %vm294_vm3, %v279_v4 }

// kernel: encoder_forward.11
= control target key start
LH: loop header
LB: loop body
LE: loop exit
PB: predicated region body
PF: predicated region fallthrough
CT: control target
= control target key end

     0   :  { %v431_v1 = vmov 0.0   ;;  %vm432_vm0 = vmmov 0   ;;  %vm193_vm1 = vcmask 261120   ;;  %vm328_vm2 = vcmask 254976   ;;  %s593_s1 = inlined_call_operand.vmem [shape: bf16[288,32], index: 1, kind: input, shape index: {}]   ;;  %s594_s0 = inlined_call_operand.vmem [shape: f32[42,288], index: 0, kind: input, shape index: {}]   ;;  %s595_s2 = inlined_call_operand.vmem [shape: f32[1,32], index: 2, kind: input, shape index: {}]   ;;  %s596_s3 = inlined_call_operand.vmem [shape: f32[42,32], index: 3, kind: output, shape index: {}]  }
   0x1   :  { %v413_v0 = vld [vmem:[%s593_s1 + $0x78] sm:$0xff]   ;;  %395 = vmatprep.subr.bf16.mxu1 %v431_v1  ;;  %399 = vmatprep.mubr.msk.bf16.mxu1 %vm432_vm0, %v431_v1  ;;  %v415_v3 = vld [vmem:[%s593_s1 + $0x70] sm:$0xff]   ;;  %v417_v5 = vld [vmem:[%s593_s1 + $0x68] sm:$0xff]  }
   0x2   :  { %v414_v2 = vld [vmem:[%s593_s1 + $0x38] sm:$0xff]   ;;  %356 = vmatprep.subr.bf16.mxu0 %v413_v0  ;;  %v416_v4 = vld [vmem:[%s593_s1 + $0x30] sm:$0xff]   ;;  %v418_v6 = vld [vmem:[%s593_s1 + $0x28] sm:$0xff]  }
   0x3   :  { %357 = vmatpush3.bf16.msra.mxu0 %v414_v2  ;;  %v419_v7 = vld [vmem:[%s593_s1 + $0x60] sm:$0xff]   ;;  %v421_v9 = vld [vmem:[%s593_s1 + $0x58] sm:$0xff]   ;;  %v427_v10 = vld [vmem:[%s593_s1 + $0x88] sm:$0xff]  }
   0x4   :  { %358 = vmatprep.subr.bf16.mxu0 %v415_v3  ;;  %v420_v8 = vld [vmem:[%s593_s1 + $0x20] sm:$0xff]   ;;  %v422_v11 = vld [vmem:[%s593_s1 + $0x18] sm:$0xff]   ;;  %v423_v12 = vld [vmem:[%s593_s1 + $0x50] sm:$0xff]   ;;  %396 = vmatpush3.bf16.msra.mxu1 %v427_v10 }
   0x5   :  { %397 = vmatprep.subr.bf16.mxu1 %v431_v1  ;;  %v430_v13 = vld [vmem:[%s593_s1 + $0x80] sm:$0xff]   ;;  %v16_v14 = vld [vmem:[%s594_s0 + $0x8] sm:$0xff]  ;;  %v424_v16 = vld [vmem:[%s593_s1 + $0x10] sm:$0xff]  }
   0x6   :  { %v19_v15 = vld [vmem:[%s594_s0 + $0x20] sm:$0xff]  ;;  %v17_v18 = vld [vmem:[%s594_s0 + $0x10] sm:$0xff]  ;;  %v20_v19 = vld [vmem:[%s594_s0 + $0x28] sm:$0xff] }
   0x7   :  { %359 = vmatpush3.bf16.msra.mxu0 %v416_v4  ;;  %v34_v17 = vpack.c.bf16 %v19_v15, %v16_v14  ;;  %v425_v20 = vld [vmem:[%s593_s1 + $0x48] sm:$0xff]   ;;  %v35_v21 = vpack.c.bf16 %v20_v19, %v17_v18  ;;  %v428_v23 = vld [vmem:[%s593_s1 + $0x40] sm:$0xff]   ;;  %v26_v25 = vld [vmem:[%s594_s0 + $0x58] sm:$0xff] }
   0x8   :  { %360 = vmatprep.subr.bf16.mxu0 %v417_v5  ;;  %398 = vmatpush3.bf16.msra.mxu1 %v430_v13  ;;  %v426_v22 = vld [vmem:[%s593_s1 + $0x8] sm:$0xff]   ;;  %v23_v24 = vld [vmem:[%s594_s0 + $0x40] sm:$0xff]  ;;  %v18_v28 = vld [vmem:[%s594_s0 + $0x18] sm:$0xff] }
   0x9   :  { %235 = vmatprep.mubr.bf16.mxu0 %v34_v17  ;;  %v429_v26 = vld [vmem:[%s593_s1] sm:$0xff]   ;;  %v38_v29 = vpack.c.bf16 %v26_v25, %v23_v24  ;;  %v22_v30 = vld [vmem:[%s594_s0 + $0x38] sm:$0xff]  ;;  %v25_v31 = vld [vmem:[%s594_s0 + $0x50] sm:$0xff] }
   0xa   :  { %v15_v27 = vld [vmem:[%s594_s0] sm:$0xff]  ;;  %v37_v33 = vpack.c.bf16 %v25_v31, %v22_v30  ;;  %v29_v34 = vld [vmem:[%s594_s0 + $0x70] sm:$0xff]  ;;  %v32_v35 = vld [vmem:[%s594_s0 + $0x88] sm:$0x3] }
   0xb   :  { %361 = vmatpush3.bf16.msra.mxu0 %v418_v6  ;;  %400 = vmatmul.mubr.msk.bf16.vlgmr.msra.gmra.mxu1 %vm193_vm1, %v35_v21  ;;  %v33_v32 = vpack.c.bf16 %v18_v28, %v15_v27  ;;  %v21_v36 = vld [vmem:[%s594_s0 + $0x30] sm:$0xff]  ;;  %v24_v37 = vld [vmem:[%s594_s0 + $0x48] sm:$0xff]  ;;  %v41_v38 = vpack.c.bf16 %v32_v35, %v29_v34  ;;  %v31_v40 = vld [vmem:[%s594_s0 + $0x80] sm:$0x3] }
   0xc   :  { %362 = vmatprep.subr.bf16.mxu0 %v419_v7  ;;  %403 = vmatprep.mubr.msk.bf16.mxu1 %vm432_vm0, %v431_v1  ;;  %v28_v39 = vld [vmem:[%s594_s0 + $0x68] sm:$0xff]  ;;  %v36_v41 = vpack.c.bf16 %v24_v37, %v21_v36  ;;  %v27_v43 = vld [vmem:[%s594_s0 + $0x60] sm:$0xff]  ;;  %v30_v44 = vld [vmem:[%s594_s0 + $0x78] sm:$0x3] }
   0xd   :  { %v40_v42 = vpack.c.bf16 %v31_v40, %v28_v39  ;;  %v39_v45 = vpack.c.bf16 %v30_v44, %v27_v43  ;;  %v334_v54 = vld [vmem:[%s595_s2] ss:$0 sm:$0xff] }
   0xf   :  { %363 = vmatpush3.bf16.msra.mxu0 %v420_v8 }
  0x10   :  { %364 = vmatprep.subr.bf16.mxu0 %v421_v9 }
  0x13   :  { %365 = vmatpush3.bf16.msra.mxu0 %v422_v11  ;;  %404 = vmatmul.mubr.msk.bf16.gmra.mxu1 %vm193_vm1, %v38_v29 }
  0x14   :  { %366 = vmatprep.subr.bf16.mxu0 %v423_v12  ;;  %407 = vmatprep.mubr.msk.bf16.mxu1 %vm432_vm0, %v431_v1 }
  0x17   :  { %367 = vmatpush3.bf16.msra.mxu0 %v424_v16 }
  0x18   :  { %368 = vmatprep.subr.bf16.mxu0 %v425_v20 }
  0x1b   :  { %369 = vmatpush3.bf16.msra.mxu0 %v426_v22  ;;  %408 = vmatmul.mubr.msk.bf16.gmra.mxu1 %vm193_vm1, %v41_v38 }
  0x1c   :  { %370 = vmatprep.subr.bf16.mxu0 %v428_v23 }
  0x1f   :  { %371 = vmatpush3.bf16.msra.mxu0 %v429_v26 }
  0x22   :  { %236 = vmatmul.mubr.bf16.vlgmr.msra.gmra.mxu0 %v33_v32 }
  0x23   :  { %243 = vmatprep.mubr.bf16.mxu0 %v37_v33 }
  0x2a   :  { %244 = vmatmul.mubr.bf16.gmra.mxu0 %v36_v41 }
  0x2b   :  { %251 = vmatprep.mubr.bf16.mxu0 %v40_v42 }
  0x32   :  { %252 = vmatmul.mubr.bf16.gmra.mxu0 %v39_v45 }
  0xcb   :  { %v294_v46 = vpop.f32.mrf.mxu1 }
  0xcd   :  { %v401_v47 = vpop.f32.mrf.mxu1 }
  0xcf   :  { %v297_v48 = vpop.f32.mrf.mxu1 }
  0xd1   :  { %v402_v49 = vpop.f32.mrf.mxu1 }
  0xd3   :  { %v302_v50 = vpop.f32.mrf.mxu1 }
  0xd5   :  { %v405_v51 = vpop.f32.mrf.mxu1 }
  0xd7   :  { %v305_v53 = vpop.f32.mrf.mxu1 }
  0xd9   :  { %v406_v57 = vpop.f32.mrf.mxu1 }
  0xdb   :  { %v310_v60 = vpop.f32.mrf.mxu1 }
  0xdd   :  { %v409_v0 = vpop.f32.mrf.mxu1 }
  0xdf   :  { %v313_v4 = vpop.f32.mrf.mxu1 }
  0xe1   :  { %v410_v8 = vpop.f32.mrf.mxu1 }
  0xe2   :  { %v372_v52 = vpop.f32.mrf.mxu0 }
  0xe4   :  { %v373_v55 = vpop.f32.mrf.mxu0 }
  0xe5   :  { %v374_v56 = vadd.f32 %v373_v55, %v372_v52 }
  0xe6   :  { %v375_v58 = vpop.f32.mrf.mxu0 }
  0xe7   :  { %v238_v59 = vadd.f32 %v374_v56, %v334_v54 }
  0xe8   :  { %v376_v61 = vpop.f32.mrf.mxu0 }
  0xe9   :  { %v295_v62 = vadd.f32 %v294_v46, %v238_v59  ;;  %v377_v63 = vadd.f32 %v376_v61, %v375_v58 }
  0xea   :  { %v378_v1 = vpop.f32.mrf.mxu0 }
  0xeb   :  { %v317_v2 = vmax.f32 %v295_v62, 0.0  ;;  %v241_v3 = vadd.f32 %v377_v63, %v334_v54 }
  0xec   :  { %v379_v5 = vpop.f32.mrf.mxu0 }
  0xed   :  { %323 = vst.msk [vmem:[%s596_s3] sm:$0xff] %vm193_vm1, %v317_v2  ;;  %v298_v6 = vadd.f32 %v297_v48, %v241_v3  ;;  %v380_v7 = vadd.f32 %v379_v5, %v378_v1 }
  0xee   :  { %v381_v9 = vpop.f32.mrf.mxu0 }
  0xef   :  { %v318_v10 = vmax.f32 %v298_v6, 0.0  ;;  %v246_v11 = vadd.f32 %v380_v7, %v334_v54 }
  0xf0   :  { %v382_v12 = vpop.f32.mrf.mxu0 }
  0xf1   :  { %324 = vst.msk [vmem:[%s596_s3 + $0x8] sm:$0xff] %vm193_vm1, %v318_v10  ;;  %v303_v13 = vadd.f32 %v302_v50, %v246_v11  ;;  %v383_v14 = vadd.f32 %v382_v12, %v381_v9 }
  0xf2   :  { %v384_v15 = vpop.f32.mrf.mxu0 }
  0xf3   :  { %v319_v16 = vmax.f32 %v303_v13, 0.0  ;;  %v249_v17 = vadd.f32 %v383_v14, %v334_v54 }
  0xf4   :  { %v385_v18 = vpop.f32.mrf.mxu0 }
  0xf5   :  { %325 = vst.msk [vmem:[%s596_s3 + $0x10] sm:$0xff] %vm193_vm1, %v319_v16  ;;  %v306_v19 = vadd.f32 %v305_v53, %v249_v17  ;;  %v386_v20 = vadd.f32 %v385_v18, %v384_v15 }
  0xf6   :  { %v387_v21 = vpop.f32.mrf.mxu0 }
  0xf7   :  { %v320_v22 = vmax.f32 %v306_v19, 0.0  ;;  %v254_v23 = vadd.f32 %v386_v20, %v334_v54 }
  0xf8   :  { %v388_v24 = vpop.f32.mrf.mxu0 }
  0xf9   :  { %326 = vst.msk [vmem:[%s596_s3 + $0x18] sm:$0xff] %vm193_vm1, %v320_v22  ;;  %v311_v25 = vadd.f32 %v310_v60, %v254_v23  ;;  %v389_v26 = vadd.f32 %v388_v24, %v387_v21 }
  0xfb   :  { %v321_v27 = vmax.f32 %v311_v25, 0.0  ;;  %v257_v28 = vadd.f32 %v389_v26, %v334_v54 }
  0xfd   :  { %327 = vst.msk [vmem:[%s596_s3 + $0x20] sm:$0xff] %vm193_vm1, %v321_v27  ;;  %v314_v29 = vadd.f32 %v313_v4, %v257_v28 }
  0xff   :  { %v322_v30 = vmax.f32 %v314_v29, 0.0 }
 0x101   :  { %329 = vst.msk [vmem:[%s596_s3 + $0x28] sm:$0x3] %vm328_vm2, %v322_v30 }

// kernel: encoder_forward.13
= control target key start
LH: loop header
LB: loop body
LE: loop exit
PB: predicated region body
PF: predicated region fallthrough
CT: control target
= control target key end

     0   :  { %vm31_vm0 = vcmask 261120   ;;  %vm35_vm1 = vcmask 259072   ;;  %v292_v14 = vmov 0.0   ;;  %vm293_vm2 = vmmov 0   ;;  %s385_s0 = inlined_call_operand.vmem [shape: f32[14,32], index: 0, kind: input, shape index: {}]   ;;  %s386_s3 = inlined_call_operand.vmem [shape: bf16[32,32], index: 3, kind: input, shape index: {}]   ;;  %s387_s5 = inlined_call_operand.vmem [shape: bf16[32,64], index: 5, kind: input, shape index: {}]   ;;  %s388_s1 = inlined_call_operand.vmem [shape: f32[1,32], index: 1, kind: input, shape index: {}]   ;;  %s389_s2 = inlined_call_operand.vmem [shape: f32[1,32], index: 2, kind: input, shape index: {}]   ;;  %s390_s4 = inlined_call_operand.vmem [shape: f32[1,32], index: 4, kind: input, shape index: {}]   ;;  %s391_s6 = inlined_call_operand.vmem [shape: f32[1,64], index: 6, kind: input, shape index: {}]   ;;  %s392_s7 = inlined_call_operand.vmem [shape: bf16[14,32], index: 7, kind: output, shape index: {0}]   ;;  %s393_s8 = inlined_call_operand.vmem [shape: bf16[14,64], index: 8, kind: output, shape index: {1}]  }
   0x1   :  { %v29_v0 = vld [vmem:[%s385_s0] sm:$0xff]  ;;  %v30_v1 = vld [vmem:[%s385_s0 + $0x8] sm:$0x3f]  ;;  %266 = vmatprep.subr.bf16.mxu0 %v292_v14  ;;  %274 = vmatprep.subr.bf16.mxu1 %v292_v14  ;;  %vm218_vm3 = vcmask 257024   ;;  %vm230_vm4 = vcmask 519168   ;;  %vm220_vm5 = vcmask 256000  }
   0x2   :  { %v32_v2 = vsel %vm31_vm0, %v29_v0, 0.0  ;;  %v36_v3 = vsel %vm35_vm1, %v30_v1, 0.0  ;;  %v284_v15 = vld [vmem:[%s386_s3 + $0x8] sm:$0xff]   ;;  %270 = vmatprep.mubr.msk.bf16.mxu0 %vm293_vm2, %v292_v14  ;;  %278 = vmatprep.mubr.msk.bf16.mxu1 %vm293_vm2, %v292_v14  ;;  %v286_v17 = vld [vmem:[%s386_s3] sm:$0xff]   ;;  %vm232_vm6 = vcmask 518144  }
   0x3   :  { %33 = vadd.xlane.f32.xlu0 %v32_v2  ;;  %v285_v16 = vld [vmem:[%s387_s5 + $0x8] sm:$0xff]   ;;  %267 = vmatpush3.bf16.msra.mxu0 %v284_v15  ;;  %v287_v18 = vld [vmem:[%s387_s5] sm:$0xff]  }
   0x4   :  { %275 = vmatpush3.bf16.msra.mxu1 %v285_v16  ;;  %268 = vmatprep.subr.bf16.mxu0 %v292_v14  ;;  %v242_v27 = vld [vmem:[%s388_s1] ss:$0 sm:$0xff] }
   0x5   :  { %276 = vmatprep.subr.bf16.mxu1 %v292_v14  ;;  %v243_v31 = vld [vmem:[%s389_s2] ss:$0 sm:$0xff] }
   0x6   :  { %v244_v36 = vld [vmem:[%s390_s4] ss:$0 sm:$0xff] }
   0x7   :  { %37 = vadd.xlane.f32.xlu0 %v36_v3  ;;  %269 = vmatpush3.bf16.msra.mxu0 %v286_v17  ;;  %v248_v37 = vld [vmem:[%s391_s6] ss:$0 sm:$0xff] }
   0x8   :  { %277 = vmatpush3.bf16.msra.mxu1 %v287_v18 }
  0x8c   :  { %v34_v4 = vpop.xlane.xlu0 %33 }
  0x8d   :  { %v40_v5 = vmul.f32 0.03125, %v34_v4 }
  0x8f   :  { %v42_v6 = vsub.f32 %v29_v0, %v40_v5 }
  0x90   :  { %v38_v7 = vpop.xlane.xlu0 %37 }
  0x91   :  { %v41_v8 = vmul.f32 0.03125, %v38_v7  ;;  %v44_v9 = vmul.f32 %v42_v6, %v42_v6 }
  0x93   :  { %v43_v10 = vsub.f32 %v30_v1, %v41_v8  ;;  %v46_v11 = vsel %vm31_vm0, %v44_v9, 0.0 }
  0x94   :  { %47 = vadd.xlane.f32.xlu1 %v46_v11 }
  0x95   :  { %v45_v12 = vmul.f32 %v43_v10, %v43_v10 }
  0x97   :  { %v49_v13 = vsel %vm35_vm1, %v45_v12, 0.0 }
  0x98   :  { %50 = vadd.xlane.f32.xlu1 %v49_v13 }
 0x11d   :  { %v48_v19 = vpop.xlane.xlu1 %47 }
 0x11e   :  { %v52_v20 = vmul.f32 0.03125, %v48_v19 }
 0x120   :  { %v54_v21 = vadd.f32 1e-12, %v52_v20 }
 0x121   :  { %v51_v22 = vpop.xlane.xlu1 %50 }
 0x122   :  { %288 = vrsqrt.f32 %v54_v21  ;;  %v53_v23 = vmul.f32 0.03125, %v51_v22 }
 0x124   :  { %v55_v24 = vadd.f32 1e-12, %v53_v23 }
 0x126   :  { %290 = vrsqrt.f32 %v55_v24 }
 0x12f   :  { %v289_v25 = vpop.eup %288 }
 0x130   :  { %v58_v26 = vmul.f32 %v289_v25, %v42_v6 }
 0x132   :  { %v67_v30 = vmul.f32 %v242_v27, %v58_v26 }
 0x133   :  { %v291_v28 = vpop.eup %290 }
 0x134   :  { %v59_v29 = vmul.f32 %v291_v28, %v43_v10  ;;  %v76_v33 = vadd.f32 %v243_v31, %v67_v30 }
 0x136   :  { %v68_v32 = vmul.f32 %v242_v27, %v59_v29 }
 0x138   :  { %v77_v34 = vadd.f32 %v243_v31, %v68_v32 }
 0x13a   :  { %v78_v35 = vpack.c.bf16 %v77_v34, %v76_v33 }
 0x13c   :  { %271 = vmatmul.mubr.msk.bf16.vlgmr.msra.gmra.mxu0 %vm31_vm0, %v78_v35  ;;  %279 = vmatmul.mubr.msk.bf16.vlgmr.msra.gmra.mxu1 %vm31_vm0, %v78_v35 }
 0x1fc   :  { %v139_v38 = vpop.f32.mrf.mxu0  ;;  %v203_v39 = vpop.f32.mrf.mxu1 }
 0x1fd   :  { %v140_v40 = vadd.f32 %v244_v36, %v139_v38  ;;  %v204_v41 = vadd.f32 %v248_v37, %v203_v39 }
 0x1fe   :  { %v272_v42 = vpop.f32.mrf.mxu0  ;;  %v280_v43 = vpop.f32.mrf.mxu1 }
 0x1ff   :  { %v256_v44 = vpack.c.bf16 %v140_v40, %v140_v40  ;;  %v258_v45 = vpack.c.bf16 %v204_v41, %v204_v41 }
 0x200   :  { %v142_v46 = vpop.f32.mrf.mxu0  ;;  %v206_v47 = vpop.f32.mrf.mxu1 }
 0x201   :  { %219 = vst.msk [vmem:[%s392_s7] sm:$0xf] %vm218_vm3, %v256_v44  ;;  %v143_v48 = vadd.f32 %v244_v36, %v142_v46  ;;  %v207_v49 = vadd.f32 %v248_v37, %v206_v47 }
 0x202   :  { %231 = vst.msk [vmem:[%s393_s8] sm:$0xf] %vm230_vm4, %v258_v45  ;;  %v273_v50 = vpop.f32.mrf.mxu0  ;;  %v281_v51 = vpop.f32.mrf.mxu1 }
 0x203   :  { %v257_v52 = vpack.c.bf16 %v143_v48, %v143_v48  ;;  %v259_v53 = vpack.c.bf16 %v207_v49, %v207_v49 }
 0x205   :  { %221 = vst.msk [vmem:[%s392_s7 + $0x4] sm:$0x7] %vm220_vm5, %v257_v52 }
 0x206   :  { %233 = vst.msk [vmem:[%s393_s8 + $0x4] sm:$0x7] %vm232_vm6, %v259_v53 }

// kernel: encoder_forward.12
= control target key start
LH: loop header
LB: loop body
LE: loop exit
PB: predicated region body
PF: predicated region fallthrough
CT: control target
= control target key end

     0   :  { %s444_s15 = smov 0   ;;  %s485_s0 = inlined_call_operand.vmem [shape: f32[2,7,96], index: 0, kind: input, shape index: {}]   ;;  %s486_s1 = inlined_call_operand.vmem [shape: bf16[96,32], index: 1, kind: input, shape index: {}]   ;;  %s487_s2 = inlined_call_operand.vmem [shape: f32[1,32], index: 2, kind: input, shape index: {}]   ;;  %s488_s3 = inlined_call_operand.vmem [shape: f32[7,32], index: 3, kind: input, shape index: {}]   ;;  %s489_s4 = inlined_call_operand.vmem [shape: f32[2,7,32], index: 4, kind: output, shape index: {}]  }
   0x1 LB: > { %s353_s16 = sadd.s32 4294967295, %s415_s15   ;;  %p357_p0 = scmp.ge.s32.totalorder %s415_s15, 1  ;;  %s415_s15 = sphi %s444_s15, %s14_s15  }
   0x2   : > { %p161_p1 = scmp.lt.s32.totalorder %s415_s15, 3 }
   0x4   : > { %p162_p2 = pnand %p357_p0, %p161_p1 }
   0x5   : > { %p185_p3 = scmp.lt.s32.totalorder (!%p162_p2), %s353_s16, 1 }
   0x6   : > { %165 = sbr.rel (%p162_p2) target bundleno = 236 (0xec), region = 36 }
   0xb   : > { %v403_v0 = vld [vmem:[%s486_s1 + $0x28] sm:$0xff]   ;;  %v417_v1 = vmov 0.0   ;;  %v404_v2 = vld [vmem:[%s486_s1 + $0x20] sm:$0xff]   ;;  %vm418_vm0 = vmmov 0   ;;  %v405_v3 = vld [vmem:[%s486_s1 + $0x18] sm:$0xff]   ;;  %s491_s16 = smov (!%p185_p3, %s353_s16), 1 }
   0xc   : > { %377 = vmatprep.subr.bf16.mxu0 %v417_v1  ;;  %389 = vmatprep.mubr.msk.bf16.mxu0 %vm418_vm0, %v417_v1  ;;  %v406_v4 = vld [vmem:[%s486_s1 + $0x10] sm:$0xff]   ;;  %s358_s25 = sshll.u32 %s491_s16, 3  ;;  %v407_v5 = vld [vmem:[%s486_s1 + $0x8] sm:$0xff]   ;;  %v408_v6 = vld [vmem:[%s486_s1] sm:$0xff]   ;;  %vm251_vm1 = vcmask 785408   ;;  %vm298_vm2 = vcmask 260096  }
   0xd   : > { %378 = vmatpush3.bf16.msra.mxu0 %v403_v0  ;;  %s188_s30 = scalar_lea.vmem %s485_s0, %s358_s25  ;;  %v360_v9 = vld [vmem:[%s487_s2] ss:$0 sm:$0xff]  ;;  %s192_s13 = scalar_lea.vmem %s489_s4, %s358_s25 }
   0xe   : > { %379 = vmatprep.subr.bf16.mxu0 %v417_v1  ;;  %v194_v7 = vld [vmem:[%s188_s30] sm:$0x7f] }
   0xf   : > { %v195_v8 = vpack.c.bf16 %v194_v7, %v194_v7  ;;  %v296_v12 = vld [vmem:[%s488_s3] sm:$0x7f] }
  0x11   : > { %380 = vmatpush3.bf16.msra.mxu0 %v404_v2 }
  0x12   : > { %381 = vmatprep.subr.bf16.mxu0 %v417_v1 }
  0x15   : > { %382 = vmatpush3.bf16.msra.mxu0 %v405_v3 }
  0x16   : > { %383 = vmatprep.subr.bf16.mxu0 %v417_v1 }
  0x19   : > { %384 = vmatpush3.bf16.msra.mxu0 %v406_v4 }
  0x1a   : > { %385 = vmatprep.subr.bf16.mxu0 %v417_v1 }
  0x1d   : > { %386 = vmatpush3.bf16.msra.mxu0 %v407_v5 }
  0x1e   : > { %387 = vmatprep.subr.bf16.mxu0 %v417_v1 }
  0x21   : > { %388 = vmatpush3.bf16.msra.mxu0 %v408_v6 }
  0x24   : > { %390 = vmatmul.mubr.msk.bf16.vlgmr.msra.gmra.mxu0 %vm251_vm1, %v195_v8 }
  0xe4   : > { %v289_v10 = vpop.f32.mrf.mxu0 }
  0xe5   : > { %v290_v11 = vadd.f32 %v360_v9, %v289_v10 }
  0xe6   : > { %v391_v13 = vpop.f32.mrf.mxu0 }
  0xe7   : > { %v295_v14 = vmul.f32 5.656854, %v290_v11 }
  0xe8   : > { %v292_v15 = vpop.f32.mrf.mxu0 }
  0xe9   : > { %v297_v16 = vadd.f32 %v296_v12, %v295_v14 }
  0xea   : > { %v392_v17 = vpop.f32.mrf.mxu0 }
  0xeb   : > { %299 = vst.msk [vmem:[%s192_s13] sm:$0x7f] %vm298_vm2, %v297_v16 }
  0xec PF: > { %s14_s15 = sadd.s32 1, %s415_s15  }
  0xed   : > { %p11_p4 = scmp.ge.s32.totalorder %s14_s15, 4  }
  0xef   :  { %13 = sbr.rel (!%p11_p4) target bundleno = 1 (0x1), region = 66 }

// kernel: encoder_forward.19
= control target key start
LH: loop header
LB: loop body
LE: loop exit
PB: predicated region body
PF: predicated region fallthrough
CT: control target
= control target key end

     0   :  { %vm16_vm0 = vcmask 261120   ;;  %vm20_vm1 = vcmask 259072   ;;  %s119_s0 = inlined_call_operand.vmem [shape: f32[14,32], index: 0, kind: input, shape index: {}]   ;;  %s120_s1 = inlined_call_operand.vmem [shape: f32[1,32], index: 1, kind: input, shape index: {}]   ;;  %s121_s2 = inlined_call_operand.vmem [shape: f32[1,32], index: 2, kind: input, shape index: {}]   ;;  %s122_s3 = inlined_call_operand.vmem [shape: f32[14,32], index: 3, kind: output, shape index: {}]  }
   0x1   :  { %v14_v0 = vld [vmem:[%s119_s0] sm:$0xff]  ;;  %v15_v1 = vld [vmem:[%s119_s0 + $0x8] sm:$0x3f] }
   0x2   :  { %v17_v2 = vsel %vm16_vm0, %v14_v0, 0.0  ;;  %v21_v3 = vsel %vm20_vm1, %v15_v1, 0.0  ;;  %v69_v21 = vld [vmem:[%s120_s1] ss:$0 sm:$0xff] }
   0x3   :  { %18 = vadd.xlane.f32.xlu0 %v17_v2  ;;  %v70_v23 = vld [vmem:[%s121_s2] ss:$0 sm:$0xff] }
   0x7   :  { %22 = vadd.xlane.f32.xlu0 %v21_v3 }
  0x8c   :  { %v19_v4 = vpop.xlane.xlu0 %18 }
  0x8d   :  { %v25_v5 = vmul.f32 0.03125, %v19_v4 }
  0x8f   :  { %v27_v6 = vsub.f32 %v14_v0, %v25_v5 }
  0x90   :  { %v23_v7 = vpop.xlane.xlu0 %22 }
  0x91   :  { %v26_v8 = vmul.f32 0.03125, %v23_v7  ;;  %v29_v9 = vmul.f32 %v27_v6, %v27_v6 }
  0x93   :  { %v28_v10 = vsub.f32 %v15_v1, %v26_v8  ;;  %v31_v11 = vsel %vm16_vm0, %v29_v9, 0.0 }
  0x94   :  { %32 = vadd.xlane.f32.xlu1 %v31_v11 }
  0x95   :  { %v30_v12 = vmul.f32 %v28_v10, %v28_v10 }
  0x97   :  { %v34_v13 = vsel %vm20_vm1, %v30_v12, 0.0 }
  0x98   :  { %35 = vadd.xlane.f32.xlu1 %v34_v13 }
 0x11d   :  { %v33_v14 = vpop.xlane.xlu1 %32 }
 0x11e   :  { %v37_v15 = vmul.f32 0.03125, %v33_v14 }
 0x120   :  { %v39_v16 = vadd.f32 1e-12, %v37_v15 }
 0x121   :  { %v36_v17 = vpop.xlane.xlu1 %35 }
 0x122   :  { %71 = vrsqrt.f32 %v39_v16  ;;  %v38_v18 = vmul.f32 0.03125, %v36_v17 }
 0x124   :  { %v40_v19 = vadd.f32 1e-12, %v38_v18 }
 0x126   :  { %73 = vrsqrt.f32 %v40_v19 }
 0x12f   :  { %v72_v20 = vpop.eup %71 }
 0x130   :  { %v43_v22 = vmul.f32 %v72_v20, %v27_v6 }
 0x132   :  { %v52_v24 = vmul.f32 %v69_v21, %v43_v22 }
 0x133   :  { %v74_v25 = vpop.eup %73 }
 0x134   :  { %v61_v26 = vadd.f32 %v70_v23, %v52_v24  ;;  %v44_v27 = vmul.f32 %v74_v25, %v28_v10 }
 0x136   :  { %63 = vst.msk [vmem:[%s122_s3] sm:$0xff] %vm16_vm0, %v61_v26  ;;  %v53_v28 = vmul.f32 %v69_v21, %v44_v27 }
 0x138   :  { %v62_v29 = vadd.f32 %v70_v23, %v53_v28 }
 0x13a   :  { %64 = vst.msk [vmem:[%s122_s3 + $0x8] sm:$0x3f] %vm20_vm1, %v62_v29 }

// kernel: encoder_forward.15
= control target key start
LH: loop header
LB: loop body
LE: loop exit
PB: predicated region body
PF: predicated region fallthrough
CT: control target
= control target key end

     0   :  { %vm29_vm0 = vcmask 261120   ;;  %vm33_vm1 = vcmask 259072   ;;  %v291_v14 = vmov 0.0   ;;  %vm292_vm2 = vmmov 0   ;;  %s392_s0 = inlined_call_operand.vmem [shape: f32[14,32], index: 0, kind: input, shape index: {}]   ;;  %s393_s3 = inlined_call_operand.vmem [shape: bf16[32,64], index: 3, kind: input, shape index: {}]   ;;  %s394_s5 = inlined_call_operand.vmem [shape: bf16[64,32], index: 5, kind: input, shape index: {}]   ;;  %s395_s1 = inlined_call_operand.vmem [shape: f32[1,32], index: 1, kind: input, shape index: {}]   ;;  %s396_s2 = inlined_call_operand.vmem [shape: f32[1,32], index: 2, kind: input, shape index: {}]   ;;  %s397_s4 = inlined_call_operand.vmem [shape: f32[1,64], index: 4, kind: input, shape index: {}]   ;;  %s398_s6 = inlined_call_operand.vmem [shape: f32[1,32], index: 6, kind: input, shape index: {}]   ;;  %s399_s7 = inlined_call_operand.vmem [shape: f32[14,32], index: 7, kind: output, shape index: {}]  }
   0x1   :  { %v336_v0 = vld [vmem:[%s392_s0] sm:$0xff]  ;;  %v341_v1 = vld [vmem:[%s392_s0 + $0x8] sm:$0x3f]  ;;  %259 = vmatprep.subr.bf16.mxu0 %v291_v14  ;;  %263 = vmatprep.mubr.msk.bf16.mxu0 %vm292_vm2, %v291_v14  ;;  %v283_v17 = vld [vmem:[%s394_s5 + $0x18] sm:$0xff]   ;;  %vm186_vm3 = vcmask 523264  }
   0x2   :  { %v30_v2 = vsel %vm29_vm0, %v336_v0, 0.0  ;;  %v34_v3 = vsel %vm33_vm1, %v341_v1, 0.0  ;;  %v281_v15 = vld [vmem:[%s393_s3 + $0x8] sm:$0xff]   ;;  %267 = vmatprep.subr.bf16.mxu1 %v291_v14  ;;  %275 = vmatprep.mubr.msk.bf16.mxu1 %vm292_vm2, %v291_v14  ;;  %v282_v16 = vld [vmem:[%s393_s3] sm:$0xff]   ;;  %v284_v35 = vld [vmem:[%s394_s5 + $0x10] sm:$0xff]  }
   0x3   :  { %31 = vadd.xlane.f32.xlu0 %v30_v2  ;;  %260 = vmatpush3.bf16.msra.mxu0 %v281_v15  ;;  %v239_v26 = vld [vmem:[%s395_s1] ss:$0 sm:$0xff]  ;;  %v285_v36 = vld [vmem:[%s394_s5 + $0x8] sm:$0xff]  }
   0x4   :  { %261 = vmatprep.subr.bf16.mxu0 %v291_v14  ;;  %268 = vmatpush3.bf16.msra.mxu1 %v283_v17  ;;  %v240_v30 = vld [vmem:[%s396_s2] ss:$0 sm:$0xff] }
   0x5   :  { %269 = vmatprep.subr.bf16.mxu1 %v291_v14  ;;  %v286_v37 = vld [vmem:[%s394_s5] sm:$0xff]  }
   0x6   :  { %v241_v38 = vld [vmem:[%s397_s4] ss:$0 sm:$0xff] }
   0x7   :  { %35 = vadd.xlane.f32.xlu0 %v34_v3  ;;  %262 = vmatpush3.bf16.msra.mxu0 %v282_v16  ;;  %v245_v48 = vld [vmem:[%s398_s6] ss:$0 sm:$0xff] }
   0x8   :  { %270 = vmatpush3.bf16.msra.mxu1 %v284_v35 }
   0x9   :  { %271 = vmatprep.subr.bf16.mxu1 %v291_v14 }
   0xc   :  { %272 = vmatpush3.bf16.msra.mxu1 %v285_v36 }
   0xd   :  { %273 = vmatprep.subr.bf16.mxu1 %v291_v14 }
  0x10   :  { %274 = vmatpush3.bf16.msra.mxu1 %v286_v37 }
  0x8c   :  { %v32_v4 = vpop.xlane.xlu0 %31 }
  0x8d   :  { %v38_v5 = vmul.f32 0.03125, %v32_v4 }
  0x8f   :  { %v40_v6 = vsub.f32 %v336_v0, %v38_v5 }
  0x90   :  { %v36_v7 = vpop.xlane.xlu0 %35 }
  0x91   :  { %v39_v8 = vmul.f32 0.03125, %v36_v7  ;;  %v42_v9 = vmul.f32 %v40_v6, %v40_v6 }
  0x93   :  { %v41_v10 = vsub.f32 %v341_v1, %v39_v8  ;;  %v44_v11 = vsel %vm29_vm0, %v42_v9, 0.0 }
  0x94   :  { %45 = vadd.xlane.f32.xlu1 %v44_v11 }
  0x95   :  { %v43_v12 = vmul.f32 %v41_v10, %v41_v10 }
  0x97   :  { %v47_v13 = vsel %vm33_vm1, %v43_v12, 0.0 }
  0x98   :  { %48 = vadd.xlane.f32.xlu1 %v47_v13 }
 0x11d   :  { %v46_v18 = vpop.xlane.xlu1 %45 }
 0x11e   :  { %v50_v19 = vmul.f32 0.03125, %v46_v18 }
 0x120   :  { %v52_v20 = vadd.f32 1e-12, %v50_v19 }
 0x121   :  { %v49_v21 = vpop.xlane.xlu1 %48 }
 0x122   :  { %287 = vrsqrt.f32 %v52_v20  ;;  %v51_v22 = vmul.f32 0.03125, %v49_v21 }
 0x124   :  { %v53_v23 = vadd.f32 1e-12, %v51_v22 }
 0x126   :  { %289 = vrsqrt.f32 %v53_v23 }
 0x12f   :  { %v288_v24 = vpop.eup %287 }
 0x130   :  { %v56_v25 = vmul.f32 %v288_v24, %v40_v6 }
 0x132   :  { %v65_v29 = vmul.f32 %v239_v26, %v56_v25 }
 0x133   :  { %v290_v27 = vpop.eup %289 }
 0x134   :  { %v57_v28 = vmul.f32 %v290_v27, %v41_v10  ;;  %v74_v32 = vadd.f32 %v240_v30, %v65_v29 }
 0x136   :  { %v66_v31 = vmul.f32 %v239_v26, %v57_v28 }
 0x138   :  { %v75_v33 = vadd.f32 %v240_v30, %v66_v31 }
 0x13a   :  { %v76_v34 = vpack.c.bf16 %v75_v33, %v74_v32 }
 0x13c   :  { %264 = vmatmul.mubr.msk.bf16.vlgmr.msra.gmra.mxu0 %vm29_vm0, %v76_v34 }
 0x1fc   :  { %v137_v39 = vpop.f32.mrf.mxu0 }
 0x1fd   :  { %v138_v41 = vadd.f32 %v241_v38, %v137_v39 }
 0x1fe   :  { %v265_v40 = vpop.f32.mrf.mxu0 }
 0x1ff   :  { %v144_v45 = vmax.f32 %v138_v41, 0.0 }
 0x200   :  { %v140_v42 = vpop.f32.mrf.mxu0 }
 0x201   :  { %v141_v43 = vadd.f32 %v241_v38, %v140_v42 }
 0x202   :  { %v266_v44 = vpop.f32.mrf.mxu0 }
 0x203   :  { %v145_v46 = vmax.f32 %v141_v43, 0.0 }
 0x205   :  { %v146_v47 = vpack.c.bf16 %v145_v46, %v144_v45 }
 0x207   :  { %276 = vmatmul.mubr.msk.bf16.vlgmr.msra.gmra.mxu1 %vm186_vm3, %v146_v47 }
 0x2c7   :  { %v224_v49 = vpop.f32.mrf.mxu1 }
 0x2c8   :  { %v225_v50 = vadd.f32 %v245_v48, %v224_v49 }
 0x2c9   :  { %v277_v51 = vpop.f32.mrf.mxu1 }
 0x2ca   :  { %v231_v52 = vadd.f32 %v225_v50, %v336_v0 }
 0x2cb   :  { %v227_v53 = vpop.f32.mrf.mxu1 }
 0x2cc   :  { %233 = vst.msk [vmem:[%s399_s7] sm:$0xff] %vm29_vm0, %v231_v52  ;;  %v228_v54 = vadd.f32 %v245_v48, %v227_v53 }
 0x2cd   :  { %v278_v55 = vpop.f32.mrf.mxu1 }
 0x2ce   :  { %v232_v56 = vadd.f32 %v228_v54, %v341_v1 }
 0x2d0   :  { %234 = vst.msk [vmem:[%s399_s7 + $0x8] sm:$0x3f] %vm33_vm1, %v232_v56 }

// kernel: encoder_forward.14
= control target key start
LH: loop header
LB: loop body
LE: loop exit
PB: predicated region body
PF: predicated region fallthrough
CT: control target
= control target key end

     0   :  { %s1244_s21 = smov 0   ;;  %s1246_s22 = smov 0   ;;  %s1382_s0 = inlined_call_operand.vmem [shape: bf16[2,7,32], index: 0, kind: input, shape index: {}]   ;;  %s1383_s1 = inlined_call_operand.vmem [shape: bf16[2,7,64], index: 1, kind: input, shape index: {}]   ;;  %s1384_s2 = inlined_call_operand.vmem [shape: f32[2,1,7], index: 2, kind: input, shape index: {}]   ;;  %s1385_s3 = inlined_call_operand.vmem [shape: f32[2,7,32], index: 3, kind: input, shape index: {}]   ;;  %s1386_s4 = inlined_call_operand.vmem [shape: bf16[32,32], index: 4, kind: input, shape index: {}]   ;;  %s1387_s5 = inlined_call_operand.vmem [shape: f32[1,32], index: 5, kind: input, shape index: {}]   ;;  %s1388_s6 = inlined_call_operand.vmem [shape: f32[2,7,32], index: 6, kind: output, shape index: {}]  }
   0x1   :  { %s1248_s23 = smov 0  }
   0x2 LB: > { %s28_s24 = sadd.s32 1, %s1189_s22  ;;  %p1017_p0 = scmp.ge.s32.totalorder %s1193_s23, 1  ;;  %s1193_s23 = sphi %s1248_s23, %s16_s23   ;;  %s1189_s22 = sphi %s1246_s22, %s1390_s22   ;;  %s1185_s21 = sphi %s1244_s21, %s1389_s21  }
   0x3   : > { %p30_p1 = scmp.ge.s32.totalorder %s28_s24, 2  ;;  %p261_p2 = scmp.lt.s32.totalorder %s1193_s23, 3 }
   0x5   : > { %s1392_s24 = smov (%p30_p1, %s28_s24), 0  ;;  %p262_p3 = pnand %p1017_p0, %p261_p2 }
   0x6   : > { %p309_p4 = scmp.lt.s32.totalorder (!%p262_p3), %s1185_s21, 1  ;;  %s1198_s11 = smov (!%p262_p3), 96  }
   0x7   : > { %265 = sbr.rel (%p262_p3) target bundleno = 1587 (0x633), region = 44  ;;  %s1199_s12 = smov (!%p262_p3), 120  }
   0x8   : > { %s1200_s13 = smov (!%p262_p3), 112   ;;  %s1201_s14 = smov (!%p262_p3), 104  }
   0x9   : > { %s1203_s15 = smov (!%p262_p3), 88   ;;  %s1204_s16 = smov (!%p262_p3), 72  }
   0xa   : > { %s1205_s17 = smov (!%p262_p3), 80   ;;  %s1206_s18 = smov (!%p262_p3), 8  }
   0xb   : > { %s1207_s27 = smov (!%p262_p3), 16  }
   0xc   : > { %v1195_v0 = vmov 0.0   ;;  %s1394_s21 = smov (!%p309_p4, %s1185_s21), 1  ;;  %vm1196_vm0 = vmmov 0   ;;  %vm342_vm1 = vcmask 64512   ;;  %v391_v4 = vlaneseq }
   0xd   : > { %1057 = vmatprep.subr.bf16.mxu0 %v1195_v0  ;;  %1063 = vmatprep.subr.bf16.mxu1 %v1195_v0  ;;  %s1018_s25 = sshll.u32 %s1394_s21, 2  ;;  %s322_s10 = scalar_lea.vmem %s1384_s2, %s1394_s21  ;;  %v1197_v8 = vmov 0   ;;  %vm397_vm4 = vcmask 55296   ;;  %vm420_vm5 = vcmask 1042432   ;;  %vm421_vm6 = vcmask 1043456  }
   0xe   : > { %1059 = vmatprep.mubr.msk.bf16.mxu0 %vm1196_vm0, %v1195_v0  ;;  %1065 = vmatprep.mubr.msk.bf16.mxu1 %vm1196_vm0, %v1195_v0  ;;  %s319_s28 = scalar_lea.vmem %s1383_s1, %s1018_s25  ;;  %s315_s7 = scalar_lea.vmem %s1382_s0, %s1018_s25  ;;  %v340_v5 = vld [vmem:[%s322_s10] sm:$0x1]  ;;  %v392_v6 = vshrl.u32 %v391_v4, 7  ;;  %v1202_v26 = vmov 65535   ;;  %vm416_vm7 = vcmask 56320   ;;  %vm467_vm8 = vcmask 63488  }
   0xf   : > { %v339_v1 = vld [vmem:[%s319_s28] sm:$0xf]  ;;  %vm341_vm2 = vcmp.gt.f32.partialorder %v340_v5, 0.5  ;;  %v422_v27 = vsel %vm420_vm5, 4294967295, %v1202_v26  ;;  %s1208_s28 = smov 24   ;;  %vm589_vm9 = vcmask 129088  }
  0x10   : > { %v347_v2 = vsel %vm342_vm1, %v339_v1, 0  ;;  %v338_v3 = vld [vmem:[%s315_s7] sm:$0xf]  ;;  %v393_v7 = vsub.s32 0, %v392_v6  ;;  %v390_v9 = vsel %vm341_vm2, 1, %v1197_v8  ;;  %v1292_v18 = vcombine.low %v339_v1, %v339_v1  ;;  %s1020_s29 = sshll.u32 %s1394_s21, 3 }
  0x11   : > { %1058 = vmatpush3.bf16.xpose.msra.mxu0 %v347_v2  ;;  %v1025_v19 = vcombine.low %v338_v3, %v338_v3  ;;  %v1299_v28 = vsel %vm421_vm6, %v422_v27, 0  ;;  %vm708_vm10 = vcmask 194688   ;;  %vm827_vm11 = vcmask 260288   ;;  %s329_s8 = scalar_lea.vmem %s1385_s3, %s1020_s29 }
  0x12   : > { %1075 = vmatprep.subr.bf16.mxu0 %v1195_v0  ;;  %v1286_v10 = vrot.slane %v390_v9, %v393_v7  ;;  %414 = vrot.lane.b32.xlu1 %v1292_v18, %s1198_s11  ;;  %vm847_vm12 = vcmask 261120   ;;  %vm901_vm13 = vcmask 260096  }
  0x14   : > { %vm395_vm3 = vcmp.eq.s32.totalorder %v1286_v10, 1 }
  0x16   : > { %474 = vrot.lane.b32.xlu1 %v1292_v18, %s1199_s12 }
  0x18   : > { %1060 = vmatmul.mubr.msk.bf16.vlgmr.msra.gmra.mxu0 %vm342_vm1, %v338_v3 }
  0x19   : > { %1077 = vmatprep.mubr.msk.bf16.mxu0 %vm1196_vm0, %v1195_v0 }
  0x1a   : > { %593 = vrot.lane.b32.xlu1 %v1292_v18, %s1200_s13 }
  0x1e   : > { %591 = vrot.lane.b32.xlu1 %v1025_v19, %s1200_s13  ;;  %s336_s13 = scalar_lea.vmem %s1388_s6, %s1020_s29 }
  0x22   : > { %712 = vrot.lane.b32.xlu1 %v1292_v18, %s1201_s14 }
  0x26   : > { %710 = vrot.lane.b32.xlu1 %v1025_v19, %s1201_s14 }
  0x84   : > { %v415_v25 = vpop.permute.xlu1 %414 }
  0x85   : > { %v425_v29 = vand.u32 %v1299_v28, %v415_v25 }
  0x87   : > { %1064 = vmatpush3.bf16.msra.mxu1 %v425_v29 }
  0x88   : > { %1069 = vmatprep.subr.bf16.mxu1 %v1195_v0  ;;  %v475_v32 = vpop.permute.xlu1 %474 }
  0x89   : > { %v480_v35 = vsel %vm342_vm1, %v475_v32, 0 }
  0x8c   : > { %v594_v37 = vpop.permute.xlu1 %593 }
  0x8d   : > { %v599_v40 = vsel %vm342_vm1, %v594_v37, 0 }
  0x90   : > { %v592_v39 = vpop.permute.xlu1 %591 }
  0x94   : > { %v713_v41 = vpop.permute.xlu1 %712 }
  0x95   : > { %v718_v42 = vsel %vm342_vm1, %v713_v41, 0 }
  0x98   : > { %v711_v43 = vpop.permute.xlu1 %710 }
  0xd8   : > { %v383_v11 = vpop.f32.mrf.mxu0 }
  0xd9   : > { %v389_v12 = vmul.f32 0.35355338, %v383_v11 }
  0xda   : > { %v1061_v13 = vpop.f32.mrf.mxu0 }
  0xdb   : > { %v396_v14 = vsel %vm395_vm3, %v389_v12, -3.4028235e+38 }
  0xdc   : > { %v386_v15 = vpop.f32.mrf.mxu0  ;;  %v398_v16 = vsel %vm397_vm4, %v396_v14, -inf }
  0xdd   : > { %399 = vmax.xlane.f32.xlu0 %v398_v16 }
  0xde   : > { %v1062_v17 = vpop.f32.mrf.mxu0 }
 0x166   : > { %v400_v20 = vpop.xlane.xlu0 %399 }
 0x167   : > { %v401_v21 = vsub.f32 %v396_v14, %v400_v20 }
 0x169   : > { %v402_v22 = vmul.f32 1.442695, %v401_v21 }
 0x16b   : > { %1155 = vpow2.f32 %v402_v22 }
 0x178   : > { %v1156_v23 = vpop.eup %1155 }
 0x179   : > { %v404_v24 = vsel %vm397_vm4, %v1156_v23, 0.0 }
 0x17a   : > { %405 = vadd.xlane.f32.xlu0 %v404_v24 }
 0x190   : > { %472 = vrot.lane.b32.xlu0 %v1025_v19, %s1199_s12 }
 0x203   : > { %v406_v30 = vpop.xlane.xlu0 %405 }
 0x204   : > { %1157 = vrcp.f32 %v406_v30 }
 0x207   : > { %v473_v38 = vpop.permute.xlu0 %472 }
 0x211   : > { %v1158_v31 = vpop.eup %1157 }
 0x212   : > { %v408_v33 = vmul.f32 %v1158_v31, %v1156_v23 }
 0x214   : > { %v409_v34 = vsel %vm395_vm3, %v408_v33, 0.0 }
 0x215   : > { %v410_v36 = vpack.c.bf16 %v409_v34, %v409_v34 }
 0x217   : > { %1066 = vmatmul.mubr.msk.bf16.vlgmr.msra.gmra.mxu1 %vm416_vm7, %v410_v36 }
 0x218   : > { %1070 = vmatpush3.bf16.xpose.msra.mxu1 %v480_v35  ;;  %1071 = vmatprep.mubr.msk.bf16.mxu1 %vm1196_vm0, %v1195_v0 }
 0x219   : > { %1081 = vmatprep.subr.bf16.mxu1 %v1195_v0 }
 0x21f   : > { %1072 = vmatmul.mubr.msk.bf16.vlgmr.msra.gmra.mxu1 %vm342_vm1, %v473_v38 }
 0x220   : > { %1082 = vmatpush3.bf16.xpose.msra.mxu1 %v599_v40  ;;  %1083 = vmatprep.mubr.msk.bf16.mxu1 %vm1196_vm0, %v1195_v0 }
 0x221   : > { %1093 = vmatprep.subr.bf16.mxu1 %v1195_v0 }
 0x227   : > { %1084 = vmatmul.mubr.msk.bf16.vlgmr.msra.gmra.mxu1 %vm342_vm1, %v592_v39 }
 0x228   : > { %1094 = vmatpush3.bf16.xpose.msra.mxu1 %v718_v42  ;;  %1095 = vmatprep.mubr.msk.bf16.mxu1 %vm1196_vm0, %v1195_v0 }
 0x229   : > { %1105 = vmatprep.subr.bf16.mxu1 %v1195_v0 }
 0x22f   : > { %1096 = vmatmul.mubr.msk.bf16.vlgmr.msra.gmra.mxu1 %vm342_vm1, %v711_v43 }
 0x230   : > { %1109 = vmatprep.mubr.msk.bf16.mxu1 %vm1196_vm0, %v1195_v0 }
 0x2d7   : > { %v461_v44 = vpop.f32.mrf.mxu1 }
 0x2d8   : > { %468 = vst.msk [vmem:[#allocation2] sm:$0x7f] %vm467_vm8, %v461_v44 }
 0x2d9   : > { %v1067_v45 = vpop.f32.mrf.mxu1 }
 0x2db   : > { %v464_v46 = vpop.f32.mrf.mxu1 }
 0x2dc   : > { %v1153_v46 = vld [vmem:[%s1386_s4 + $0x8] sm:$0xff]  }
 0x2dd   : > { %v1068_v47 = vpop.f32.mrf.mxu1  ;;  %1106 = vmatpush3.bf16.msra.mxu1 %v1153_v46 }
 0x2de   : > { %1107 = vmatprep.subr.bf16.mxu1 %v1195_v0 }
 0x2df   : > { %v516_v48 = vpop.f32.mrf.mxu1 }
 0x2e0   : > { %v522_v49 = vmul.f32 0.35355338, %v516_v48  ;;  %v1154_v48 = vld [vmem:[%s1386_s4] sm:$0xff]  }
 0x2e1   : > { %v1073_v50 = vpop.f32.mrf.mxu1  ;;  %1108 = vmatpush3.bf16.msra.mxu1 %v1154_v48 }
 0x2e2   : > { %v523_v51 = vsel %vm395_vm3, %v522_v49, -3.4028235e+38 }
 0x2e3   : > { %v519_v52 = vpop.f32.mrf.mxu1  ;;  %v524_v53 = vsel %vm397_vm4, %v523_v51, -inf }
 0x2e4   : > { %525 = vmax.xlane.f32.xlu1 %v524_v53 }
 0x2e5   : > { %v1074_v54 = vpop.f32.mrf.mxu1 }
 0x2e7   : > { %v635_v55 = vpop.f32.mrf.mxu1 }
 0x2e8   : > { %v641_v56 = vmul.f32 0.35355338, %v635_v55 }
 0x2e9   : > { %v1085_v57 = vpop.f32.mrf.mxu1 }
 0x2ea   : > { %v642_v58 = vsel %vm395_vm3, %v641_v56, -3.4028235e+38 }
 0x2eb   : > { %v638_v59 = vpop.f32.mrf.mxu1  ;;  %v643_v60 = vsel %vm397_vm4, %v642_v58, -inf }
 0x2ec   : > { %644 = vmax.xlane.f32.xlu0 %v643_v60  ;;  %v891_v60 = vld [vmem:[%s329_s8] sm:$0x7f] }
 0x2ed   : > { %v1086_v61 = vpop.f32.mrf.mxu1 }
 0x2ef   : > { %v754_v62 = vpop.f32.mrf.mxu1 }
 0x2f0   : > { %v760_v63 = vmul.f32 0.35355338, %v754_v62  ;;  %v1035_v62 = vld [vmem:[%s1387_s5] ss:$0 sm:$0xff] }
 0x2f1   : > { %v1097_v1 = vpop.f32.mrf.mxu1 }
 0x2f2   : > { %v761_v2 = vsel %vm395_vm3, %v760_v63, -3.4028235e+38 }
 0x2f3   : > { %v757_v3 = vpop.f32.mrf.mxu1  ;;  %v762_v4 = vsel %vm397_vm4, %v761_v2, -inf }
 0x2f4   : > { %763 = vmax.xlane.f32.xlu1 %v762_v4 }
 0x2f5   : > { %v1098_v5 = vpop.f32.mrf.mxu1 }
 0x305   : > { %537 = vrot.lane.b32.xlu1 %v1292_v18, %s1203_s15 }
 0x36d   : > { %v526_v6 = vpop.xlane.xlu1 %525 }
 0x36e   : > { %v527_v7 = vsub.f32 %v523_v51, %v526_v6 }
 0x370   : > { %v528_v8 = vmul.f32 1.442695, %v527_v7 }
 0x372   : > { %1159 = vpow2.f32 %v528_v8 }
 0x375   : > { %v645_v9 = vpop.xlane.xlu0 %644 }
 0x376   : > { %v646_v11 = vsub.f32 %v642_v58, %v645_v9 }
 0x378   : > { %v647_v12 = vmul.f32 1.442695, %v646_v11 }
 0x37a   : > { %1161 = vpow2.f32 %v647_v12 }
 0x37d   : > { %v764_v13 = vpop.xlane.xlu1 %763 }
 0x37e   : > { %v765_v14 = vsub.f32 %v761_v2, %v764_v13 }
 0x37f   : > { %v1160_v15 = vpop.eup %1159 }
 0x380   : > { %v766_v16 = vmul.f32 1.442695, %v765_v14  ;;  %v530_v17 = vsel %vm397_vm4, %v1160_v15, 0.0 }
 0x381   : > { %531 = vadd.xlane.f32.xlu0 %v530_v17  ;;  %v538_v19 = vpop.permute.xlu1 %537 }
 0x382   : > { %1163 = vpow2.f32 %v766_v16  ;;  %v543_v20 = vand.u32 %v538_v19, %v1299_v28 }
 0x384   : > { %1076 = vmatpush3.bf16.msra.mxu0 %v543_v20 }
 0x385   : > { %1087 = vmatprep.subr.bf16.mxu0 %v1195_v0 }
 0x387   : > { %v1162_v21 = vpop.eup %1161 }
 0x388   : > { %v649_v22 = vsel %vm397_vm4, %v1162_v21, 0.0 }
 0x389   : > { %650 = vadd.xlane.f32.xlu1 %v649_v22 }
 0x38f   : > { %v1164_v23 = vpop.eup %1163 }
 0x390   : > { %v768_v24 = vsel %vm397_vm4, %v1164_v23, 0.0 }
 0x391   : > { %769 = vadd.xlane.f32.xlu0 %v768_v24 }
 0x39a   : > { %775 = vrot.lane.b32.xlu1 %v1292_v18, %s1204_s16 }
 0x3a7   : > { %656 = vrot.lane.b32.xlu0 %v1292_v18, %s1205_s17 }
 0x40a   : > { %v532_v25 = vpop.xlane.xlu0 %531 }
 0x40b   : > { %1165 = vrcp.f32 %v532_v25 }
 0x412   : > { %v651_v26 = vpop.xlane.xlu1 %650 }
 0x413   : > { %1167 = vrcp.f32 %v651_v26 }
 0x416   : > { %v776_v35 = vpop.permute.xlu1 %775 }
 0x417   : > { %v781_v38 = vand.u32 %v776_v35, %v1299_v28 }
 0x418   : > { %v1166_v27 = vpop.eup %1165 }
 0x419   : > { %v534_v29 = vmul.f32 %v1166_v27, %v1160_v15 }
 0x41a   : > { %v770_v30 = vpop.xlane.xlu0 %769 }
 0x41b   : > { %1169 = vrcp.f32 %v770_v30  ;;  %v535_v31 = vsel %vm395_vm3, %v534_v29, 0.0 }
 0x41c   : > { %v536_v32 = vpack.c.bf16 %v535_v31, %v535_v31 }
 0x41e   : > { %v657_v33 = vpop.permute.xlu0 %656  ;;  %1078 = vmatmul.mubr.msk.bf16.vlgmr.msra.gmra.mxu0 %vm416_vm7, %v536_v32 }
 0x41f   : > { %v662_v34 = vand.u32 %v657_v33, %v1299_v28  ;;  %1089 = vmatprep.mubr.msk.bf16.mxu0 %vm1196_vm0, %v1195_v0 }
 0x420   : > { %v1168_v18 = vpop.eup %1167 }
 0x421   : > { %1088 = vmatpush3.bf16.msra.mxu0 %v662_v34  ;;  %v653_v36 = vmul.f32 %v1168_v18, %v1162_v21 }
 0x422   : > { %1099 = vmatprep.subr.bf16.mxu0 %v1195_v0 }
 0x423   : > { %v654_v37 = vsel %vm395_vm3, %v653_v36, 0.0 }
 0x424   : > { %v655_v39 = vpack.c.bf16 %v654_v37, %v654_v37 }
 0x426   : > { %1090 = vmatmul.mubr.msk.bf16.vlgmr.msra.gmra.mxu0 %vm416_vm7, %v655_v39 }
 0x427   : > { %1100 = vmatpush3.bf16.msra.mxu0 %v781_v38  ;;  %1101 = vmatprep.mubr.msk.bf16.mxu0 %vm1196_vm0, %v1195_v0 }
 0x428   : > { %v1170_v40 = vpop.eup %1169 }
 0x429   : > { %v772_v41 = vmul.f32 %v1170_v40, %v1164_v23 }
 0x42b   : > { %v773_v42 = vsel %vm395_vm3, %v772_v41, 0.0 }
 0x42c   : > { %v774_v43 = vpack.c.bf16 %v773_v42, %v773_v42 }
 0x42e   : > { %1102 = vmatmul.mubr.msk.bf16.vlgmr.msra.gmra.mxu0 %vm416_vm7, %v774_v43 }
 0x4de   : > { %v579_v44 = vpop.f32.mrf.mxu0 }
 0x4df   : > { %586 = vrot.lane.b32.xlu1 %v579_v44, %s1206_s18 }
 0x4e0   : > { %v1079_v45 = vpop.f32.mrf.mxu0 }
 0x4e2   : > { %v582_v28 = vpop.f32.mrf.mxu0 }
 0x4e4   : > { %v1080_v47 = vpop.f32.mrf.mxu0 }
 0x4e6   : > { %v698_v10 = vpop.f32.mrf.mxu0 }
 0x4e7   : > { %705 = vrot.lane.b32.xlu0 %v698_v10, %s1207_s27 }
 0x4e8   : > { %v1091_v49 = vpop.f32.mrf.mxu0 }
 0x4ea   : > { %v701_v50 = vpop.f32.mrf.mxu0 }
 0x4ec   : > { %v1092_v51 = vpop.f32.mrf.mxu0 }
 0x4ee   : > { %v817_v52 = vpop.f32.mrf.mxu0 }
 0x4ef   : > { %824 = vrot.lane.b32.xlu1 %v817_v52, %s1208_s28 }
 0x4f0   : > { %v1103_v53 = vpop.f32.mrf.mxu0 }
 0x4f2   : > { %v820_v54 = vpop.f32.mrf.mxu0 }
 0x4f4   : > { %v1104_v55 = vpop.f32.mrf.mxu0 }
 0x551   : > { %v587_v56 = vpop.permute.xlu1 %586 }
 0x552   : > { %590 = vst.msk [vmem:[#allocation2] sm:$0x7f] %vm589_vm9, %v587_v56 }
 0x559   : > { %v706_v57 = vpop.permute.xlu0 %705 }
 0x55a   : > { %709 = vst.msk [vmem:[#allocation2] sm:$0x7f] %vm708_vm10, %v706_v57 }
 0x561   : > { %v825_v0 = vpop.permute.xlu1 %824 }
 0x562   : > { %828 = vst.msk [vmem:[#allocation2] sm:$0x7f] %vm827_vm11, %v825_v0 }
 0x569   : > { %v829_v58 = vld [vmem:[#allocation2] sm:$0x7f] }
 0x56a   : > { %v830_v59 = vpack.c.bf16 %v829_v58, %v829_v58 }
 0x56c   : > { %1110 = vmatmul.mubr.msk.bf16.vlgmr.msra.gmra.mxu1 %vm847_vm12, %v830_v59 }
 0x62c   : > { %v885_v61 = vpop.f32.mrf.mxu1 }
 0x62d   : > { %v892_v63 = vadd.f32 %v891_v60, %v885_v61 }
 0x62e   : > { %v1111_v1 = vpop.f32.mrf.mxu1 }
 0x62f   : > { %v900_v2 = vadd.f32 %v1035_v62, %v892_v63 }
 0x630   : > { %v888_v3 = vpop.f32.mrf.mxu1 }
 0x631   : > { %902 = vst.msk [vmem:[%s336_s13] sm:$0x7f] %vm901_vm13, %v900_v2 }
 0x632   : > { %v1112_v4 = vpop.f32.mrf.mxu1 }
 0x633 PF: > { %s16_s23 = sadd.s32 1, %s1193_s23   ;;  %s1389_s21 = smov %s1189_s22 }
 0x634   : > { %p13_p5 = scmp.ge.s32.totalorder %s16_s23, 4   ;;  %s1390_s22 = smov %s1392_s24 }
 0x636   :  { %15 = sbr.rel (!%p13_p5) target bundleno = 2 (0x2), region = 83 }

</bundles_post_ra>
